<compile_context>
chip_gen: v7x
topology: tpu7x:2x2x1
jax: 0.10.0
libtpu: 0.0.40
codegen_flags: <defaults>
</compile_context>

<pallas_src>
import math

import numpy as np
import jax
import jax.numpy as jnp
from jax.experimental import pallas as pl
from jax.experimental.pallas import tpu as pltpu


_SUB, _LANE = 8, 128
_TM, _TN, _TK = 256, 256, 512          # preferred tiles (K large: fewer acc RMW passes)

_VMEM_CACHE = None


def _vmem_limit_bytes():
    """Generation-aware VMEM budget (≈3/4 of physical, capped at 96 MiB)."""
    global _VMEM_CACHE
    if _VMEM_CACHE is None:
        try:
            info = pltpu.get_tpu_info()
            cap = int(getattr(info, "vmem_capacity_bytes", 128 * 1024 * 1024))
        except Exception:
            cap = 64 * 1024 * 1024
        _VMEM_CACHE = int(max(32 * 1024 * 1024, min((cap * 3) // 4, 96 * 1024 * 1024)))
    return _VMEM_CACHE


def _round_up(x, m):
    return ((x + m - 1) // m) * m


def _plan(dim, pref, align):
    """(tile, padded_dim): aligned tile that always divides the padded dim."""
    tile = pref if dim > pref else _round_up(dim, align)
    return tile, _round_up(dim, tile)


def _plan_n(dim, pref=_TN):
    """Lane-dim plan; prefer >=2 programs on this (parallel) axis when possible (v7x)."""
    tile, padded = _plan(dim, pref, _LANE)
    if padded // tile < 2 and padded >= 2 * _LANE:
        tile = max(_LANE, ((padded // 2) // _LANE) * _LANE)
        padded = _round_up(dim, tile)
    return tile, padded


def _pad_axes(x, targets):
    widths = [(0, t - s) for s, t in zip(x.shape, targets)]
    if all(w == (0, 0) for w in widths):
        return x
    return jnp.pad(x, widths)


# --------------------------------------------------------------------------
# Pallas kernel: K-accumulated (batched) matmul
# --------------------------------------------------------------------------
def _bmm_kernel(a_ref, b_ref, o_ref, acc_ref):
    """C[g] = A[g] @ B[g]; grid = (G, M/tm, N/tn, K/tk), K last + accumulator."""
    k = pl.program_id(3)

    @pl.when(k == 0)
    def _():
        acc_ref[...] = jnp.zeros_like(acc_ref)

    acc_ref[...] += jnp.dot(a_ref[...], b_ref[...],
                            preferred_element_type=jnp.float32)

    @pl.when(k == pl.num_programs(3) - 1)
    def _():
        o_ref[...] = acc_ref[...].astype(o_ref.dtype)


def pallas_bmm(a, b, compute_dtype=jnp.bfloat16, out_dtype=jnp.float32):
    """Per-batch C[g] = A[g] @ B[g] with zero-padding to aligned tiles."""
    G, M, K = a.shape
    G2, K2, N = b.shape
    assert G == G2 and K == K2
    tm, Mp = _plan(M, _TM, _SUB)
    tk, Kp = _plan(K, _TK, _LANE)
    tn, Np = _plan_n(N)
    a = _pad_axes(a.astype(compute_dtype), (G, Mp, Kp))
    b = _pad_axes(b.astype(compute_dtype), (G, Kp, Np))
    out = pl.pallas_call(
        _bmm_kernel,
        out_shape=jax.ShapeDtypeStruct((G, Mp, Np), out_dtype),
        grid=(G, Mp // tm, Np // tn, Kp // tk),
        in_specs=[pl.BlockSpec((None, tm, tk), lambda g, i, j, k: (g, i, k)),
                  pl.BlockSpec((None, tk, tn), lambda g, i, j, k: (g, k, j))],
        out_specs=pl.BlockSpec((None, tm, tn), lambda g, i, j, k: (g, i, j)),
        scratch_shapes=[pltpu.VMEM((tm, tn), jnp.float32)],
        compiler_params=pltpu.CompilerParams(
            dimension_semantics=("parallel", "parallel", "parallel", "arbitrary"),
            vmem_limit_bytes=_vmem_limit_bytes()),
    )(a, b)
    return out[:, :M, :N]


def pallas_matmul(a, b, compute_dtype=jnp.bfloat16, out_dtype=jnp.float32):
    """C = A @ B (2-D) via the batched kernel with a single batch entry."""
    return pallas_bmm(a[None], b[None],
                      compute_dtype=compute_dtype, out_dtype=out_dtype)[0]


# --------------------------------------------------------------------------
# numpy setup: Wigner matrices, SOFT grid, transform tables (constants / glue)
# --------------------------------------------------------------------------
def _wigner_d_matrix(l, beta):
    """Wigner small-d matrix d^l_{m,n}(beta); rows m=-l..l, cols n=-l..l."""
    # TODO(synk): factorial formula; switch to a recursive construction for b_out >~ 15.
    d = np.zeros((2 * l + 1, 2 * l + 1), dtype=np.float64)
    c = math.cos(beta / 2.0)
    s = math.sin(beta / 2.0)
    for mi, m in enumerate(range(-l, l + 1)):
        for ni, n in enumerate(range(-l, l + 1)):
            pref = math.sqrt(math.factorial(l + m) * math.factorial(l - m)
                             * math.factorial(l + n) * math.factorial(l - n))
            k_min = max(0, n - m)
            k_max = min(l - m, l + n)
            acc = 0.0
            for k in range(k_min, k_max + 1):
                acc += ((-1.0) ** (k + m - n)
                        / (math.factorial(l + n - k) * math.factorial(k)
                           * math.factorial(m - n + k) * math.factorial(l - m - k))
                        * c ** (2 * l + n - m - 2 * k) * s ** (m - n + 2 * k))
            d[mi, ni] = pref * acc
    return d


def _wigner_D_matrix(l, alpha, beta, gamma):
    """D^l_{m,n}(alpha,beta,gamma) = e^{-i m a} d^l_{mn}(b) e^{-i n g}."""
    m = np.arange(-l, l + 1)
    d = _wigner_d_matrix(l, beta)
    return np.exp(-1j * m[:, None] * alpha) * d * np.exp(-1j * m[None, :] * gamma)


def _s3_quadrature_weights(b):
    """Driscoll-Healy / SOFT beta quadrature weights (2*b values)."""
    w = np.zeros(2 * b, dtype=np.float64)
    for j in range(2 * b):
        acc = sum(math.sin((2 * j + 1) * (2 * k + 1) * math.pi / (4 * b)) / (2 * k + 1)
                  for k in range(b))
        w[j] = (2.0 / b) * math.sin(math.pi * (2 * j + 1) / (4 * b)) * acc
    # TODO(synk): absolute normalization of lie_learn's S3 quadrature not reproduced exactly.
    return w


def _nspec(b_out):
    return sum((2 * l + 1) ** 2 for l in range(b_out))


def _build_fwd_sft_matrix(b_in, b_out):
    """Forward SO(3) Fourier transform as a dense matrix [nspec, (2*b_in)^3] (complex)."""
    n = 2 * b_in
    betas = (np.arange(n) + 0.5) * math.pi / n
    alphas = np.arange(n) * math.pi / b_in
    gammas = np.arange(n) * math.pi / b_in
    w = _s3_quadrature_weights(b_in)
    T = np.zeros((_nspec(b_out), n, n, n), dtype=np.complex128)
    row = 0
    for l in range(b_out):
        L = 2 * l + 1
        d = np.stack([w[j] * _wigner_d_matrix(l, betas[j]) for j in range(n)])  # [n, L, L]
        m = np.arange(-l, l + 1)
        ea = np.exp(-1j * np.outer(m, alphas))  # [L, n]
        eg = np.exp(-1j * np.outer(m, gammas))  # [L, n]
        blk = (d.transpose(1, 2, 0)[:, :, :, None, None]
               * ea[:, None, None, :, None]
               * eg[None, :, None, None, :])     # [L, L, n(beta), n(alpha), n(gamma)]
        T[row:row + L * L] = blk.reshape(L * L, n, n, n)
        row += L * L
    return T.reshape(_nspec(b_out), n ** 3)


def _build_inv_sft_matrix(b_inverse, b_out):
    """Inverse SO(3) Fourier transform as a dense matrix [(2*b_inverse)^3, nspec] (complex)."""
    n = 2 * b_inverse
    betas = (np.arange(n) + 0.5) * math.pi / n
    alphas = np.arange(n) * math.pi / b_inverse
    gammas = np.arange(n) * math.pi / b_inverse
    Ti = np.zeros((n, n, n, _nspec(b_out)), dtype=np.complex128)
    col = 0
    for l in range(b_out):
        L = 2 * l + 1
        d = np.stack([_wigner_d_matrix(l, bj) for bj in betas])  # [n, L, L]
        m = np.arange(-l, l + 1)
        ea = np.exp(1j * np.outer(alphas, m))  # [n, L]
        eg = np.exp(1j * np.outer(gammas, m))  # [n, L]
        blk = (2 * l + 1) * (d[:, None, None, :, :]
                             * ea[None, :, None, :, None]
                             * eg[None, None, :, None, :])  # [nb, na, ng, L, L]
        Ti[..., col:col + L * L] = blk.reshape(n, n, n, L * L)
        col += L * L
    return Ti.reshape(n ** 3, _nspec(b_out))


def _build_kernel_ft_matrix(b_out, grid):
    """so3_rft setup: F[i, (l,m,n)] = conj(D^l_{mn}(grid_i)), grid_i = (beta, alpha, gamma)."""
    F = np.zeros((len(grid), _nspec(b_out)), dtype=np.complex128)
    for i, (beta, alpha, gamma) in enumerate(grid):
        rows = [_wigner_D_matrix(l, alpha, beta, gamma).conj().reshape(-1) for l in range(b_out)]
        F[i] = np.concatenate(rows)
    return F


def make_so3_grid(n_beta=2, n_alpha=3, n_gamma=2, max_beta=math.pi / 8):
    """Small deterministic near-identity SO(3) grid; tuples of (beta, alpha, gamma)."""
    grid = []
    for ib in range(n_beta):
        beta = (ib + 1) * max_beta / n_beta
        for ia in range(n_alpha):
            alpha = 2.0 * math.pi * ia / n_alpha
            for ig in range(n_gamma):
                gamma = 2.0 * math.pi * ig / n_gamma - alpha
                grid.append((beta, alpha, gamma))
    return tuple(grid)


# --------------------------------------------------------------------------
# The module
# --------------------------------------------------------------------------
class SO3ConvolutionPallas:
    def __init__(self, nfeature_in, nfeature_out, b_in, b_out, b_inverse, grid, key,
                 compute_dtype=jnp.bfloat16):
        # compute_dtype=bfloat16 feeds bf16 MXU inputs (f32 accumulation) and halves
        # the constant-table HBM bytes; pass jnp.float32 for exact-parity testing.
        self.nfeature_in = nfeature_in
        self.nfeature_out = nfeature_out
        self.b_in = b_in
        self.b_out = b_out
        self.b_inverse = b_inverse
        self.grid = grid
        self.compute_dtype = compute_dtype
        self.nspec = _nspec(b_out)
        self.Lmax = 2 * b_out - 1
        # padded spectral width: multiple of 128 with at least one guaranteed zero
        # column (index self.nspec) used as the gather sentinel for the L<Lmax pad.
        self.nspec_pad = _round_up(self.nspec + 1, _LANE)
        self.scaling = 1.0 / math.sqrt(len(grid) * nfeature_in * b_out ** 3.0 / b_in ** 3.0)

        # parameters (deterministic synthetic init, matching the PyTorch shapes)
        self.kernel = jax.random.uniform(key, (nfeature_in, nfeature_out, len(grid)),
                                         jnp.float32, -1.0, 1.0)
        self.bias = jnp.zeros((1, nfeature_out, 1, 1, 1), jnp.float32)

        S_in = (2 * b_in) ** 3
        S_out = (2 * b_inverse) ** 3
        nsp = self.nspec_pad

        # ---- forward SFT table, lane-dense, [real | imag] concatenated along N ----
        TfT = _build_fwd_sft_matrix(b_in, b_out).T          # [S_in, nspec] complex
        Tf_cat = np.zeros((S_in, 2 * nsp), np.float32)
        Tf_cat[:, :self.nspec] = TfT.real
        Tf_cat[:, nsp:nsp + self.nspec] = TfT.imag
        self.Tf_cat = jnp.asarray(Tf_cat)

        # ---- kernel-RFT table (tiny; consumed by a plain XLA dot) ----
        Fk = _build_kernel_ft_matrix(b_out, grid)           # [n_grid, nspec] complex
        Fk_cat = np.zeros((len(grid), 2 * nsp), np.float32)
        Fk_cat[:, :self.nspec] = Fk.real
        Fk_cat[:, nsp:nsp + self.nspec] = Fk.imag
        self.Fk_cat = jnp.asarray(Fk_cat)

        # ---- per-degree gather indices for so3_mm repacking (sentinel -> zero col) ----
        idx = np.full((b_out, self.Lmax, self.Lmax), self.nspec, np.int32)
        off = 0
        for l in range(b_out):
            L = 2 * l + 1
            idx[l, :L, :L] = off + np.arange(L)[:, None] * L + np.arange(L)[None, :]
            off += L * L
        self.spec_idx = jnp.asarray(idx)

        # ---- inverse SFT table rebuilt in the padded (l, m, n) layout ----
        # out_r = [Zr | Zi] @ [[TiP_r], [-TiP_i]]   (real output only, single matmul)
        TiT = _build_inv_sft_matrix(b_inverse, b_out).T     # [nspec, S_out] complex
        TiP = np.zeros((b_out * self.Lmax * self.Lmax, S_out), np.complex128)
        off = 0
        for l in range(b_out):
            L = 2 * l + 1
            for m in range(L):
                r = l * self.Lmax * self.Lmax + m * self.Lmax
                TiP[r:r + L] = TiT[off + m * L: off + (m + 1) * L]
            off += L * L
        self.TiP_cat = jnp.asarray(
            np.concatenate([TiP.real, -TiP.imag], axis=0).astype(np.float32))

    def __call__(self, x):
        """x: [batch, feature_in, beta, alpha, gamma] -> [batch, feature_out, beta, alpha, gamma]."""
        nb = x.shape[0]
        Fin, Fout = self.nfeature_in, self.nfeature_out
        assert x.shape[1] == Fin
        assert x.shape[2] == 2 * self.b_in
        assert x.shape[3] == 2 * self.b_in
        assert x.shape[4] == 2 * self.b_in
        cd = self.compute_dtype
        S_in = (2 * self.b_in) ** 3
        nsp = self.nspec_pad
        Lmax = self.Lmax
        bo = self.b_out

        # ---- SO3_fft_real: one lane-dense Pallas matmul against the [real|imag] table ----
        x_mat = x.reshape(nb * Fin, S_in)
        xh = pallas_matmul(x_mat, self.Tf_cat, compute_dtype=cd)       # [nb*Fin, 2*nsp] f32
        xh_r, xh_i = xh[:, :nsp], xh[:, nsp:]                          # padded cols are zero

        # ---- so3_rft(kernel * scaling): tiny (M=Fin*Fout, K=len(grid)) -> plain XLA dot ----
        k_mat = (self.kernel * self.scaling).reshape(Fin * Fout, len(self.grid))
        yh = jnp.dot(k_mat, self.Fk_cat, preferred_element_type=jnp.float32)
        yh_r, yh_i = yh[:, :nsp], yh[:, nsp:]

        # ---- so3_mm: grouped per-degree matmul, degrees padded to Lmax on a grid axis ----
        # Repacking is a single constant gather; the zero-sentinel column provides the pad.
        def pack_x(a):   # [nb*Fin, nsp] -> [b_out, Lmax*nb, Lmax*Fin]; rows (m,b), cols (k,fi)
            t = a.reshape(nb, Fin, nsp).transpose(2, 0, 1)             # [nsp, nb, Fin]
            g = jnp.take(t, self.spec_idx, axis=0)                     # [bo, Lm(m), Lm(k), nb, Fin]
            return g.transpose(0, 1, 3, 2, 4).reshape(bo, Lmax * nb, Lmax * Fin)

        def pack_y(a):   # [Fin*Fout, nsp] -> [b_out, Lmax*Fin, Lmax*Fout]; rows (k,fi), cols (n,fo)
            t = a.reshape(Fin, Fout, nsp).transpose(2, 0, 1)           # [nsp, Fin, Fout]
            g = jnp.take(t, self.spec_idx, axis=0)                     # [bo, Lm(k), Lm(n), Fin, Fout]
            return g.transpose(0, 1, 3, 2, 4).reshape(bo, Lmax * Fin, Lmax * Fout)

        Xr, Xi = pack_x(xh_r), pack_x(xh_i)
        Yr, Yi = pack_y(yh_r), pack_y(yh_i)
        # complex x complex fused into ONE real batched matmul:
        #   [Xr | Xi] @ [[Yr, Yi], [-Yi, Yr]] = [Re | Im]
        A = jnp.concatenate([Xr, Xi], axis=2)                          # [bo, Lm*nb, 2*Lm*Fin]
        B = jnp.concatenate([jnp.concatenate([Yr, Yi], axis=2),
                             jnp.concatenate([-Yi, Yr], axis=2)], axis=1)
        C = pallas_bmm(A, B, compute_dtype=cd)                         # [bo, Lm*nb, 2*Lm*Fout] f32
        Nz = Lmax * Fout
        C_r, C_i = C[:, :, :Nz], C[:, :, Nz:]

        # ---- SO3_ifft_real (real part only), lane-dense output [(b,fo), (beta,alpha,gamma)] ----
        def to_rows(c):  # [bo, Lm*nb, Lm*Fout] -> [nb*Fout, bo*Lmax^2]
            return (c.reshape(bo, Lmax, nb, Lmax, Fout)
                    .transpose(2, 4, 0, 1, 3)
                    .reshape(nb * Fout, bo * Lmax * Lmax))

        z_cat = jnp.concatenate([to_rows(C_r), to_rows(C_i)], axis=1)  # [nb*Fout, 2*bo*Lmax^2]
        out_flat = pallas_matmul(z_cat, self.TiP_cat, compute_dtype=cd)  # [nb*Fout, (2 b_inv)^3]
        tb = 2 * self.b_inverse
        out = out_flat.reshape(nb, Fout, tb, tb, tb)                   # layout-free reshape

        # ---- bias (broadcast elementwise add; trivial XLA glue) ----
        return out + self.bias


# --------------------------------------------------------------------------
if __name__ == "__main__":
    key = jax.random.PRNGKey(0)
    kx, kw = jax.random.split(key)

    batch, f_in, f_out = 2, 4, 6
    b_in, b_out, b_inv = 4, 3, 4
    grid = make_so3_grid()                     # 12 SO(3) grid points (beta, alpha, gamma)

    conv = SO3ConvolutionPallas(f_in, f_out, b_in, b_out, b_inv, grid, kw)
    x = jax.random.normal(kx, (batch, f_in, 2 * b_in, 2 * b_in, 2 * b_in), jnp.float32)

    y = jax.jit(conv.__call__)(x)
    y = jax.block_until_ready(y)

    assert y.shape == (batch, f_out, 2 * b_inv, 2 * b_inv, 2 * b_inv), y.shape
    assert y.dtype == jnp.float32
    assert bool(jnp.all(jnp.isfinite(y)))
    print("KERNEL_OK")
</pallas_src>

<mosaic_0001>
module attributes {stable_mosaic.version = 11 : i64} {
  func.func @_bmm_kernel(%arg0: i32, %arg1: i32, %arg2: i32, %arg3: i32, %arg4: memref<1x8x512xbf16, #tpu.memory_space<vmem>>, %arg5: memref<1x512x128xbf16, #tpu.memory_space<vmem>>, %arg6: memref<1x8x128xf32, #tpu.memory_space<vmem>>, %arg7: memref<8x128xf32, #tpu.memory_space<vmem>>) attributes {dimension_semantics = [#tpu.dimension_semantics<parallel>, #tpu.dimension_semantics<parallel>, #tpu.dimension_semantics<parallel>, #tpu.dimension_semantics<arbitrary>], iteration_bounds = array<i64: 1, 1, 2, 1>, scalar_prefetch = 0 : i64, scratch_operands = 1 : i64, tpu.core_type = #tpu.core_type<tc>, window_params = [{transform_indices = @transform_0, window_bounds = array<i64: 1, 8, 512>}, {transform_indices = @transform_1, window_bounds = array<i64: 1, 512, 128>}, {transform_indices = @transform_2, window_bounds = array<i64: 1, 8, 128>}]} {
    %c0_i32 = arith.constant 0 : i32
    %0 = arith.cmpi eq, %arg3, %c0_i32 : i32
    %1 = arith.extui %0 : i1 to i32
    %c0_i32_0 = arith.constant 0 : i32
    %2 = arith.cmpi ne, %1, %c0_i32_0 : i32
    scf.if %2 {
      %cst_12 = arith.constant 0.000000e+00 : f32
      %14 = vector.broadcast %cst_12 : f32 to vector<8x128xf32>
      %c0_13 = arith.constant 0 : index
      %c0_14 = arith.constant 0 : index
      %15 = vector.load %arg7[%c0_13, %c0_14] : memref<8x128xf32, #tpu.memory_space<vmem>>, vector<8x128xf32>
      tpu.vector_store %arg7[%c0_13, %c0_14], %14 {strides = array<i32>} : memref<8x128xf32, #tpu.memory_space<vmem>>, vector<8x128xf32>,
    } else {
    }
    %c0 = arith.constant 0 : index
    %c0_1 = arith.constant 0 : index
    %3 = vector.load %arg7[%c0, %c0_1] : memref<8x128xf32, #tpu.memory_space<vmem>>, vector<8x128xf32>
    %c0_2 = arith.constant 0 : index
    %c0_3 = arith.constant 0 : index
    %c0_4 = arith.constant 0 : index
    %4 = vector.load %arg4[%c0_2, %c0_3, %c0_4] : memref<1x8x512xbf16, #tpu.memory_space<vmem>>, vector<1x8x512xbf16>
    %5 = vector.shape_cast %4 : vector<1x8x512xbf16> to vector<8x512xbf16>
    %c0_5 = arith.constant 0 : index
    %c0_6 = arith.constant 0 : index
    %c0_7 = arith.constant 0 : index
    %6 = vector.load %arg5[%c0_5, %c0_6, %c0_7] : memref<1x512x128xbf16, #tpu.memory_space<vmem>>, vector<1x512x128xbf16>
    %7 = vector.shape_cast %6 : vector<1x512x128xbf16> to vector<512x128xbf16>
    %cst = arith.constant dense<0.000000e+00> : vector<8x128xf32>
    %8 = tpu.matmul %5, %7, %cst {dimension_numbers = #tpu.dot_dimension_numbers<[1], [0], [0], [1], [0, 0, 1, 1], [], []>} : vector<8x512xbf16>, vector<512x128xbf16>, vector<8x128xf32> -> vector<8x128xf32>
    %9 = arith.addf %3, %8 : vector<8x128xf32>
    %c0_8 = arith.constant 0 : index
    %c0_9 = arith.constant 0 : index
    %10 = vector.load %arg7[%c0_8, %c0_9] : memref<8x128xf32, #tpu.memory_space<vmem>>, vector<8x128xf32>
    tpu.vector_store %arg7[%c0_8, %c0_9], %9 {strides = array<i32>} : memref<8x128xf32, #tpu.memory_space<vmem>>, vector<8x128xf32>,
    %c0_i32_10 = arith.constant 0 : i32
    %11 = arith.cmpi eq, %arg3, %c0_i32_10 : i32
    %12 = arith.extui %11 : i1 to i32
    %c0_i32_11 = arith.constant 0 : i32
    %13 = arith.cmpi ne, %12, %c0_i32_11 : i32
    scf.if %13 {
      %c0_12 = arith.constant 0 : index
      %c0_13 = arith.constant 0 : index
      %14 = vector.load %arg7[%c0_12, %c0_13] : memref<8x128xf32, #tpu.memory_space<vmem>>, vector<8x128xf32>
      %c0_14 = arith.constant 0 : index
      %c0_15 = arith.constant 0 : index
      %c0_16 = arith.constant 0 : index
      %15 = vector.load %arg6[%c0_14, %c0_15, %c0_16] : memref<1x8x128xf32, #tpu.memory_space<vmem>>, vector<1x8x128xf32>
      %16 = vector.shape_cast %15 : vector<1x8x128xf32> to vector<8x128xf32>
      %17 = vector.shape_cast %14 : vector<8x128xf32> to vector<1x8x128xf32>
      tpu.vector_store %arg6[%c0_14, %c0_15, %c0_16], %17 {strides = array<i32>} : memref<1x8x128xf32, #tpu.memory_space<vmem>>, vector<1x8x128xf32>,
    } else {
    }
    return
  }
  func.func @transform_0(%arg0: i32, %arg1: i32, %arg2: i32, %arg3: i32) -> (i32, i32, i32) {
    %c0_i32 = arith.constant 0 : i32
    return %arg0, %arg1, %arg3 : i32, i32, i32
  }
  func.func @transform_1(%arg0: i32, %arg1: i32, %arg2: i32, %arg3: i32) -> (i32, i32, i32) {
    %c0_i32 = arith.constant 0 : i32
    return %arg0, %arg3, %arg2 : i32, i32, i32
  }
  func.func @transform_2(%arg0: i32, %arg1: i32, %arg2: i32, %arg3: i32) -> (i32, i32, i32) {
    %c0_i32 = arith.constant 0 : i32
    return %arg0, %arg1, %arg2 : i32, i32, i32
  }
}

module attributes {stable_mosaic.version = 11 : i64} {
  func.func @_bmm_kernel(%arg0: i32, %arg1: i32, %arg2: i32, %arg3: i32, %arg4: memref<1x16x128xbf16, #tpu.memory_space<vmem>>, %arg5: memref<1x128x128xbf16, #tpu.memory_space<vmem>>, %arg6: memref<1x16x128xf32, #tpu.memory_space<vmem>>, %arg7: memref<16x128xf32, #tpu.memory_space<vmem>>) attributes {dimension_semantics = [#tpu.dimension_semantics<parallel>, #tpu.dimension_semantics<parallel>, #tpu.dimension_semantics<parallel>, #tpu.dimension_semantics<arbitrary>], iteration_bounds = array<i64: 3, 1, 1, 1>, scalar_prefetch = 0 : i64, scratch_operands = 1 : i64, tpu.core_type = #tpu.core_type<tc>, window_params = [{transform_indices = @transform_0, window_bounds = array<i64: 1, 16, 128>}, {transform_indices = @transform_1, window_bounds = array<i64: 1, 128, 128>}, {transform_indices = @transform_2, window_bounds = array<i64: 1, 16, 128>}]} {
    %c0_i32 = arith.constant 0 : i32
    %0 = arith.cmpi eq, %arg3, %c0_i32 : i32
    %1 = arith.extui %0 : i1 to i32
    %c0_i32_0 = arith.constant 0 : i32
    %2 = arith.cmpi ne, %1, %c0_i32_0 : i32
    scf.if %2 {
      %cst_12 = arith.constant 0.000000e+00 : f32
      %14 = vector.broadcast %cst_12 : f32 to vector<16x128xf32>
      %c0_13 = arith.constant 0 : index
      %c0_14 = arith.constant 0 : index
      %15 = vector.load %arg7[%c0_13, %c0_14] : memref<16x128xf32, #tpu.memory_space<vmem>>, vector<16x128xf32>
      tpu.vector_store %arg7[%c0_13, %c0_14], %14 {strides = array<i32>} : memref<16x128xf32, #tpu.memory_space<vmem>>, vector<16x128xf32>,
    } else {
    }
    %c0 = arith.constant 0 : index
    %c0_1 = arith.constant 0 : index
    %3 = vector.load %arg7[%c0, %c0_1] : memref<16x128xf32, #tpu.memory_space<vmem>>, vector<16x128xf32>
    %c0_2 = arith.constant 0 : index
    %c0_3 = arith.constant 0 : index
    %c0_4 = arith.constant 0 : index
    %4 = vector.load %arg4[%c0_2, %c0_3, %c0_4] : memref<1x16x128xbf16, #tpu.memory_space<vmem>>, vector<1x16x128xbf16>
    %5 = vector.shape_cast %4 : vector<1x16x128xbf16> to vector<16x128xbf16>
    %c0_5 = arith.constant 0 : index
    %c0_6 = arith.constant 0 : index
    %c0_7 = arith.constant 0 : index
    %6 = vector.load %arg5[%c0_5, %c0_6, %c0_7] : memref<1x128x128xbf16, #tpu.memory_space<vmem>>, vector<1x128x128xbf16>
    %7 = vector.shape_cast %6 : vector<1x128x128xbf16> to vector<128x128xbf16>
    %cst = arith.constant dense<0.000000e+00> : vector<16x128xf32>
    %8 = tpu.matmul %5, %7, %cst {dimension_numbers = #tpu.dot_dimension_numbers<[1], [0], [0], [1], [0, 0, 1, 1], [], []>} : vector<16x128xbf16>, vector<128x128xbf16>, vector<16x128xf32> -> vector<16x128xf32>
    %9 = arith.addf %3, %8 : vector<16x128xf32>
    %c0_8 = arith.constant 0 : index
    %c0_9 = arith.constant 0 : index
    %10 = vector.load %arg7[%c0_8, %c0_9] : memref<16x128xf32, #tpu.memory_space<vmem>>, vector<16x128xf32>
    tpu.vector_store %arg7[%c0_8, %c0_9], %9 {strides = array<i32>} : memref<16x128xf32, #tpu.memory_space<vmem>>, vector<16x128xf32>,
    %c0_i32_10 = arith.constant 0 : i32
    %11 = arith.cmpi eq, %arg3, %c0_i32_10 : i32
    %12 = arith.extui %11 : i1 to i32
    %c0_i32_11 = arith.constant 0 : i32
    %13 = arith.cmpi ne, %12, %c0_i32_11 : i32
    scf.if %13 {
      %c0_12 = arith.constant 0 : index
      %c0_13 = arith.constant 0 : index
      %14 = vector.load %arg7[%c0_12, %c0_13] : memref<16x128xf32, #tpu.memory_space<vmem>>, vector<16x128xf32>
      %c0_14 = arith.constant 0 : index
      %c0_15 = arith.constant 0 : index
      %c0_16 = arith.constant 0 : index
      %15 = vector.load %arg6[%c0_14, %c0_15, %c0_16] : memref<1x16x128xf32, #tpu.memory_space<vmem>>, vector<1x16x128xf32>
      %16 = vector.shape_cast %15 : vector<1x16x128xf32> to vector<16x128xf32>
      %17 = vector.shape_cast %14 : vector<16x128xf32> to vector<1x16x128xf32>
      tpu.vector_store %arg6[%c0_14, %c0_15, %c0_16], %17 {strides = array<i32>} : memref<1x16x128xf32, #tpu.memory_space<vmem>>, vector<1x16x128xf32>,
    } else {
    }
    return
  }
  func.func @transform_0(%arg0: i32, %arg1: i32, %arg2: i32, %arg3: i32) -> (i32, i32, i32) {
    %c0_i32 = arith.constant 0 : i32
    return %arg0, %arg1, %arg3 : i32, i32, i32
  }
  func.func @transform_1(%arg0: i32, %arg1: i32, %arg2: i32, %arg3: i32) -> (i32, i32, i32) {
    %c0_i32 = arith.constant 0 : i32
    return %arg0, %arg3, %arg2 : i32, i32, i32
  }
  func.func @transform_2(%arg0: i32, %arg1: i32, %arg2: i32, %arg3: i32) -> (i32, i32, i32) {
    %c0_i32 = arith.constant 0 : i32
    return %arg0, %arg1, %arg2 : i32, i32, i32
  }
}

module attributes {stable_mosaic.version = 11 : i64} {
  func.func @_bmm_kernel(%arg0: i32, %arg1: i32, %arg2: i32, %arg3: i32, %arg4: memref<1x16x256xbf16, #tpu.memory_space<vmem>>, %arg5: memref<1x256x256xbf16, #tpu.memory_space<vmem>>, %arg6: memref<1x16x256xf32, #tpu.memory_space<vmem>>, %arg7: memref<16x256xf32, #tpu.memory_space<vmem>>) attributes {dimension_semantics = [#tpu.dimension_semantics<parallel>, #tpu.dimension_semantics<parallel>, #tpu.dimension_semantics<parallel>, #tpu.dimension_semantics<arbitrary>], iteration_bounds = array<i64: 1, 1, 2, 1>, scalar_prefetch = 0 : i64, scratch_operands = 1 : i64, tpu.core_type = #tpu.core_type<tc>, window_params = [{transform_indices = @transform_0, window_bounds = array<i64: 1, 16, 256>}, {transform_indices = @transform_1, window_bounds = array<i64: 1, 256, 256>}, {transform_indices = @transform_2, window_bounds = array<i64: 1, 16, 256>}]} {
    %c0_i32 = arith.constant 0 : i32
    %0 = arith.cmpi eq, %arg3, %c0_i32 : i32
    %1 = arith.extui %0 : i1 to i32
    %c0_i32_0 = arith.constant 0 : i32
    %2 = arith.cmpi ne, %1, %c0_i32_0 : i32
    scf.if %2 {
      %cst_12 = arith.constant 0.000000e+00 : f32
      %14 = vector.broadcast %cst_12 : f32 to vector<16x256xf32>
      %c0_13 = arith.constant 0 : index
      %c0_14 = arith.constant 0 : index
      %15 = vector.load %arg7[%c0_13, %c0_14] : memref<16x256xf32, #tpu.memory_space<vmem>>, vector<16x256xf32>
      tpu.vector_store %arg7[%c0_13, %c0_14], %14 {strides = array<i32>} : memref<16x256xf32, #tpu.memory_space<vmem>>, vector<16x256xf32>,
    } else {
    }
    %c0 = arith.constant 0 : index
    %c0_1 = arith.constant 0 : index
    %3 = vector.load %arg7[%c0, %c0_1] : memref<16x256xf32, #tpu.memory_space<vmem>>, vector<16x256xf32>
    %c0_2 = arith.constant 0 : index
    %c0_3 = arith.constant 0 : index
    %c0_4 = arith.constant 0 : index
    %4 = vector.load %arg4[%c0_2, %c0_3, %c0_4] : memref<1x16x256xbf16, #tpu.memory_space<vmem>>, vector<1x16x256xbf16>
    %5 = vector.shape_cast %4 : vector<1x16x256xbf16> to vector<16x256xbf16>
    %c0_5 = arith.constant 0 : index
    %c0_6 = arith.constant 0 : index
    %c0_7 = arith.constant 0 : index
    %6 = vector.load %arg5[%c0_5, %c0_6, %c0_7] : memref<1x256x256xbf16, #tpu.memory_space<vmem>>, vector<1x256x256xbf16>
    %7 = vector.shape_cast %6 : vector<1x256x256xbf16> to vector<256x256xbf16>
    %cst = arith.constant dense<0.000000e+00> : vector<16x256xf32>
    %8 = tpu.matmul %5, %7, %cst {dimension_numbers = #tpu.dot_dimension_numbers<[1], [0], [0], [1], [0, 0, 1, 1], [], []>} : vector<16x256xbf16>, vector<256x256xbf16>, vector<16x256xf32> -> vector<16x256xf32>
    %9 = arith.addf %3, %8 : vector<16x256xf32>
    %c0_8 = arith.constant 0 : index
    %c0_9 = arith.constant 0 : index
    %10 = vector.load %arg7[%c0_8, %c0_9] : memref<16x256xf32, #tpu.memory_space<vmem>>, vector<16x256xf32>
    tpu.vector_store %arg7[%c0_8, %c0_9], %9 {strides = array<i32>} : memref<16x256xf32, #tpu.memory_space<vmem>>, vector<16x256xf32>,
    %c0_i32_10 = arith.constant 0 : i32
    %11 = arith.cmpi eq, %arg3, %c0_i32_10 : i32
    %12 = arith.extui %11 : i1 to i32
    %c0_i32_11 = arith.constant 0 : i32
    %13 = arith.cmpi ne, %12, %c0_i32_11 : i32
    scf.if %13 {
      %c0_12 = arith.constant 0 : index
      %c0_13 = arith.constant 0 : index
      %14 = vector.load %arg7[%c0_12, %c0_13] : memref<16x256xf32, #tpu.memory_space<vmem>>, vector<16x256xf32>
      %c0_14 = arith.constant 0 : index
      %c0_15 = arith.constant 0 : index
      %c0_16 = arith.constant 0 : index
      %15 = vector.load %arg6[%c0_14, %c0_15, %c0_16] : memref<1x16x256xf32, #tpu.memory_space<vmem>>, vector<1x16x256xf32>
      %16 = vector.shape_cast %15 : vector<1x16x256xf32> to vector<16x256xf32>
      %17 = vector.shape_cast %14 : vector<16x256xf32> to vector<1x16x256xf32>
      tpu.vector_store %arg6[%c0_14, %c0_15, %c0_16], %17 {strides = array<i32>} : memref<1x16x256xf32, #tpu.memory_space<vmem>>, vector<1x16x256xf32>,
    } else {
    }
    return
  }
  func.func @transform_0(%arg0: i32, %arg1: i32, %arg2: i32, %arg3: i32) -> (i32, i32, i32) {
    %c0_i32 = arith.constant 0 : i32
    return %arg0, %arg1, %arg3 : i32, i32, i32
  }
  func.func @transform_1(%arg0: i32, %arg1: i32, %arg2: i32, %arg3: i32) -> (i32, i32, i32) {
    %c0_i32 = arith.constant 0 : i32
    return %arg0, %arg3, %arg2 : i32, i32, i32
  }
  func.func @transform_2(%arg0: i32, %arg1: i32, %arg2: i32, %arg3: i32) -> (i32, i32, i32) {
    %c0_i32 = arith.constant 0 : i32
    return %arg0, %arg1, %arg2 : i32, i32, i32
  }
}

</mosaic_0001>

<bundles_post_ra>
// kernel: squeeze.3
= control target key start
LH: loop header
LB: loop body
LE: loop exit
PB: predicated region body
PF: predicated region fallthrough
CT: control target
= control target key end

     0   :  { %s1408_s8 = smov 120   ;;  %s2004_s0 = inlined_call_operand.vmem [shape: f32[1,12,512], index: 0, kind: input, shape index: {}]   ;;  %s2005_s1 = inlined_call_operand.hbm [shape: f32[2,6,8,8,8], index: 1, kind: output, shape index: {}]  }
   0x1   :  { %v1437_v0 = vld.sshfl [vmem:[%s2004_s0 + $0x10] sm:$0xff pattern:$0xb3a29180]   ;;  %v1443_v1 = vld.sshfl [vmem:[%s2004_s0] sm:$0xff pattern:$0xb3a29180]  }
   0x2   :  { %148 = vrot.lane.b32.xlu1 %v1437_v0, %s1408_s8  ;;  %122 = vrot.lane.b32.xlu0 %v1443_v1, %s1408_s8  ;;  %v1449_v2 = vld.sshfl [vmem:[%s2004_s0 + $0x14] sm:$0xff pattern:$0xb3a29180]   ;;  %v1454_v3 = vld.sshfl [vmem:[%s2004_s0 + $0x4] sm:$0xff pattern:$0xb3a29180]  }
   0x3   :  { %2 = vsyncpa [#allocation1], 0  ;;  %v1461_v4 = vld.sshfl [vmem:[%s2004_s0 + $0x30] sm:$0xff pattern:$0xb3a29180]   ;;  %s1409_s19 = smov 112  }
   0x4   :  { %v1466_v5 = vld.sshfl [vmem:[%s2004_s0 + $0x20] sm:$0xff pattern:$0xb3a29180]   ;;  %s1410_s20 = smov 104   ;;  %s1411_s21 = smov 96   ;;  %vm4_vm0 = vcmask 64512  }
   0x5   :  { %s1412_s22 = smov 88   ;;  %s1413_s23 = smov 80   ;;  %v3_v32 = vld [vmem:[%s2004_s0] sm:$0xff]   ;;  %v1286_v33 = vld [vmem:[%s2004_s0 + $0x8] sm:$0xff]   ;;  %v1287_v34 = vld [vmem:[%s2004_s0 + $0x10] sm:$0xff]  }
   0x6   :  { %161 = vrot.lane.b32.xlu1 %v1449_v2, %s1408_s8  ;;  %135 = vrot.lane.b32.xlu0 %v1454_v3, %s1408_s8  ;;  %s1414_s24 = smov 72   ;;  %s1415_s25 = smov 64   ;;  %5 = vst.msk [vmem:[#allocation0] sm:$0x1] %vm4_vm0, %v3_v32   ;;  %7 = vst.msk [vmem:[#allocation0 + $0x3f] sm:$0x2] %vm4_vm0, %v3_v32  }
   0x7   :  { %s1416_s26 = smov 56   ;;  %s1417_s27 = smov 48   ;;  %9 = vst.msk [vmem:[#allocation0 + $0x7e] sm:$0x4] %vm4_vm0, %v3_v32   ;;  %11 = vst.msk [vmem:[#allocation0 + $0xbd] sm:$0x8] %vm4_vm0, %v3_v32  }
   0x8   :  { %s1418_s28 = smov 40   ;;  %s1419_s29 = smov 32   ;;  %13 = vst.msk [vmem:[#allocation0 + $0xfc] sm:$0x10] %vm4_vm0, %v3_v32   ;;  %15 = vst.msk [vmem:[#allocation0 + $0x13b] sm:$0x20] %vm4_vm0, %v3_v32  }
   0x9   :  { %s1420_s30 = smov 24   ;;  %s1421_s2 = smov 16   ;;  %17 = vst.msk [vmem:[#allocation0 + $0x17a] sm:$0x40] %vm4_vm0, %v3_v32   ;;  %19 = vst.msk [vmem:[#allocation0 + $0x1b9] sm:$0x80] %vm4_vm0, %v3_v32  }
   0xa   :  { %187 = vrot.lane.b32.xlu1 %v1461_v4, %s1408_s8  ;;  %174 = vrot.lane.b32.xlu0 %v1466_v5, %s1408_s8  ;;  %24 = vst.msk [vmem:[#allocation0 + $0x10] sm:$0x1] %vm4_vm0, %v1286_v33   ;;  %26 = vst.msk [vmem:[#allocation0 + $0x4f] sm:$0x2] %vm4_vm0, %v1286_v33   ;;  %v1288_v35 = vld [vmem:[%s2004_s0 + $0x18] sm:$0xff]  }
   0xb   :  { %28 = vst.msk [vmem:[#allocation0 + $0x8e] sm:$0x4] %vm4_vm0, %v1286_v33   ;;  %30 = vst.msk [vmem:[#allocation0 + $0xcd] sm:$0x8] %vm4_vm0, %v1286_v33   ;;  %v1289_v36 = vld [vmem:[%s2004_s0 + $0x20] sm:$0xf]  }
   0xc   :  { %32 = vst.msk [vmem:[#allocation0 + $0x10c] sm:$0x10] %vm4_vm0, %v1286_v33   ;;  %34 = vst.msk [vmem:[#allocation0 + $0x14b] sm:$0x20] %vm4_vm0, %v1286_v33   ;;  %v1290_v37 = vld [vmem:[%s2004_s0 + $0x28] sm:$0xf]  }
   0xd   :  { %36 = vst.msk [vmem:[#allocation0 + $0x18a] sm:$0x40] %vm4_vm0, %v1286_v33   ;;  %38 = vst.msk [vmem:[#allocation0 + $0x1c9] sm:$0x80] %vm4_vm0, %v1286_v33   ;;  %v1291_v38 = vld [vmem:[%s2004_s0 + $0x30] sm:$0xf]  }
   0xe   :  { %212 = vrot.lane.b32.xlu1 %v1454_v3, %s1409_s19  ;;  %199 = vrot.lane.b32.xlu0 %v1443_v1, %s1409_s19  ;;  %43 = vst.msk [vmem:[#allocation0 + $0x20] sm:$0x1] %vm4_vm0, %v1287_v34   ;;  %45 = vst.msk [vmem:[#allocation0 + $0x5f] sm:$0x2] %vm4_vm0, %v1287_v34   ;;  %v1292_v39 = vld [vmem:[%s2004_s0 + $0x38] sm:$0xf]  }
   0xf   :  { %47 = vst.msk [vmem:[#allocation0 + $0x9e] sm:$0x4] %vm4_vm0, %v1287_v34   ;;  %49 = vst.msk [vmem:[#allocation0 + $0xdd] sm:$0x8] %vm4_vm0, %v1287_v34   ;;  %s1422_s0 = smov 8  }
  0x10   :  { %51 = vst.msk [vmem:[#allocation0 + $0x11c] sm:$0x10] %vm4_vm0, %v1287_v34   ;;  %53 = vst.msk [vmem:[#allocation0 + $0x15b] sm:$0x20] %vm4_vm0, %v1287_v34  }
  0x11   :  { %55 = vst.msk [vmem:[#allocation0 + $0x19a] sm:$0x40] %vm4_vm0, %v1287_v34   ;;  %57 = vst.msk [vmem:[#allocation0 + $0x1d9] sm:$0x80] %vm4_vm0, %v1287_v34  }
  0x12   :  { %238 = vrot.lane.b32.xlu1 %v1449_v2, %s1409_s19  ;;  %225 = vrot.lane.b32.xlu0 %v1437_v0, %s1409_s19  ;;  %62 = vst.msk [vmem:[#allocation0 + $0x30] sm:$0x1] %vm4_vm0, %v1288_v35   ;;  %64 = vst.msk [vmem:[#allocation0 + $0x6f] sm:$0x2] %vm4_vm0, %v1288_v35  }
  0x13   :  { %66 = vst.msk [vmem:[#allocation0 + $0xae] sm:$0x4] %vm4_vm0, %v1288_v35   ;;  %68 = vst.msk [vmem:[#allocation0 + $0xed] sm:$0x8] %vm4_vm0, %v1288_v35  }
  0x14   :  { %70 = vst.msk [vmem:[#allocation0 + $0x12c] sm:$0x10] %vm4_vm0, %v1288_v35   ;;  %72 = vst.msk [vmem:[#allocation0 + $0x16b] sm:$0x20] %vm4_vm0, %v1288_v35  }
  0x15   :  { %74 = vst.msk [vmem:[#allocation0 + $0x1aa] sm:$0x40] %vm4_vm0, %v1288_v35   ;;  %76 = vst.msk [vmem:[#allocation0 + $0x1e9] sm:$0x80] %vm4_vm0, %v1288_v35  }
  0x16   :  { %264 = vrot.lane.b32.xlu1 %v1461_v4, %s1409_s19  ;;  %251 = vrot.lane.b32.xlu0 %v1466_v5, %s1409_s19  ;;  %81 = vst.msk [vmem:[#allocation0 + $0x200] sm:$0x1] %vm4_vm0, %v1289_v36   ;;  %83 = vst.msk [vmem:[#allocation0 + $0x23f] sm:$0x2] %vm4_vm0, %v1289_v36   ;;  %s1423_s19 = smov [#allocation0]  }
  0x17   :  { %85 = vst.msk [vmem:[#allocation0 + $0x27e] sm:$0x4] %vm4_vm0, %v1289_v36   ;;  %87 = vst.msk [vmem:[#allocation0 + $0x2bd] sm:$0x8] %vm4_vm0, %v1289_v36  }
  0x18   :  { %92 = vst.msk [vmem:[#allocation0 + $0x210] sm:$0x1] %vm4_vm0, %v1290_v37   ;;  %94 = vst.msk [vmem:[#allocation0 + $0x24f] sm:$0x2] %vm4_vm0, %v1290_v37  }
  0x19   :  { %96 = vst.msk [vmem:[#allocation0 + $0x28e] sm:$0x4] %vm4_vm0, %v1290_v37   ;;  %98 = vst.msk [vmem:[#allocation0 + $0x2cd] sm:$0x8] %vm4_vm0, %v1290_v37  }
  0x1a   :  { %289 = vrot.lane.b32.xlu1 %v1454_v3, %s1410_s20  ;;  %276 = vrot.lane.b32.xlu0 %v1443_v1, %s1410_s20  ;;  %103 = vst.msk [vmem:[#allocation0 + $0x220] sm:$0x1] %vm4_vm0, %v1291_v38   ;;  %105 = vst.msk [vmem:[#allocation0 + $0x25f] sm:$0x2] %vm4_vm0, %v1291_v38  }
  0x1b   :  { %107 = vst.msk [vmem:[#allocation0 + $0x29e] sm:$0x4] %vm4_vm0, %v1291_v38   ;;  %109 = vst.msk [vmem:[#allocation0 + $0x2dd] sm:$0x8] %vm4_vm0, %v1291_v38  }
  0x1c   :  { %114 = vst.msk [vmem:[#allocation0 + $0x230] sm:$0x1] %vm4_vm0, %v1292_v39   ;;  %116 = vst.msk [vmem:[#allocation0 + $0x26f] sm:$0x2] %vm4_vm0, %v1292_v39  }
  0x1d   :  { %118 = vst.msk [vmem:[#allocation0 + $0x2ae] sm:$0x4] %vm4_vm0, %v1292_v39   ;;  %120 = vst.msk [vmem:[#allocation0 + $0x2ed] sm:$0x8] %vm4_vm0, %v1292_v39  }
  0x1e   :  { %315 = vrot.lane.b32.xlu1 %v1449_v2, %s1410_s20  ;;  %302 = vrot.lane.b32.xlu0 %v1437_v0, %s1410_s20 }
  0x22   :  { %341 = vrot.lane.b32.xlu1 %v1461_v4, %s1410_s20  ;;  %328 = vrot.lane.b32.xlu0 %v1466_v5, %s1410_s20  ;;  %s1280_s20 = sshll.u32 %s1423_s19, 4  ;;  %s1281_s20 = int_to_ptr.vmem [resolvable:$true] %s1280_s20 }
  0x23   :  { %p1389_p1 = scmp.lt.s32.totalorder %s1281_s20, %s1281_s20 }
  0x26   :  { %366 = vrot.lane.b32.xlu1 %v1454_v3, %s1411_s21  ;;  %353 = vrot.lane.b32.xlu0 %v1443_v1, %s1411_s21 }
  0x2a   :  { %392 = vrot.lane.b32.xlu1 %v1449_v2, %s1411_s21  ;;  %379 = vrot.lane.b32.xlu0 %v1437_v0, %s1411_s21 }
  0x2e   :  { %418 = vrot.lane.b32.xlu1 %v1461_v4, %s1411_s21  ;;  %405 = vrot.lane.b32.xlu0 %v1466_v5, %s1411_s21  ;;  %s1384_s21 = scalar_lea.vmem %s1281_s20, 12288 }
  0x2f   :  { %p1385_p0 = scmp.ne.s32.totalorder %s1281_s20, %s1384_s21  ;;  %p1390_p2 = scmp.lt.s32.totalorder %s1384_s21, %s1384_s21 }
  0x31   :  { %p1391_p3 = por %p1390_p2, %p1389_p1 }
  0x32   :  { %443 = vrot.lane.b32.xlu1 %v1454_v3, %s1412_s22  ;;  %430 = vrot.lane.b32.xlu0 %v1443_v1, %s1412_s22 }
  0x33   :  { %p1392_p4 = pnand %p1391_p3, %p1385_p0 }
  0x36   :  { %469 = vrot.lane.b32.xlu1 %v1449_v2, %s1412_s22  ;;  %456 = vrot.lane.b32.xlu0 %v1437_v0, %s1412_s22 }
  0x3a   :  { %495 = vrot.lane.b32.xlu1 %v1461_v4, %s1412_s22  ;;  %482 = vrot.lane.b32.xlu0 %v1466_v5, %s1412_s22 }
  0x3e   :  { %520 = vrot.lane.b32.xlu1 %v1454_v3, %s1413_s23  ;;  %507 = vrot.lane.b32.xlu0 %v1443_v1, %s1413_s23 }
  0x42   :  { %546 = vrot.lane.b32.xlu1 %v1449_v2, %s1413_s23  ;;  %533 = vrot.lane.b32.xlu0 %v1437_v0, %s1413_s23 }
  0x46   :  { %572 = vrot.lane.b32.xlu1 %v1461_v4, %s1413_s23  ;;  %559 = vrot.lane.b32.xlu0 %v1466_v5, %s1413_s23 }
  0x4a   :  { %597 = vrot.lane.b32.xlu1 %v1454_v3, %s1414_s24  ;;  %584 = vrot.lane.b32.xlu0 %v1443_v1, %s1414_s24 }
  0x4e   :  { %623 = vrot.lane.b32.xlu1 %v1449_v2, %s1414_s24  ;;  %610 = vrot.lane.b32.xlu0 %v1437_v0, %s1414_s24 }
  0x52   :  { %649 = vrot.lane.b32.xlu1 %v1461_v4, %s1414_s24  ;;  %636 = vrot.lane.b32.xlu0 %v1466_v5, %s1414_s24 }
  0x56   :  { %674 = vrot.lane.b32.xlu1 %v1454_v3, %s1415_s25  ;;  %661 = vrot.lane.b32.xlu0 %v1443_v1, %s1415_s25 }
  0x5a   :  { %700 = vrot.lane.b32.xlu1 %v1449_v2, %s1415_s25  ;;  %687 = vrot.lane.b32.xlu0 %v1437_v0, %s1415_s25 }
  0x5e   :  { %726 = vrot.lane.b32.xlu1 %v1461_v4, %s1415_s25  ;;  %713 = vrot.lane.b32.xlu0 %v1466_v5, %s1415_s25 }
  0x62   :  { %751 = vrot.lane.b32.xlu1 %v1454_v3, %s1416_s26  ;;  %738 = vrot.lane.b32.xlu0 %v1443_v1, %s1416_s26 }
  0x66   :  { %777 = vrot.lane.b32.xlu1 %v1449_v2, %s1416_s26  ;;  %764 = vrot.lane.b32.xlu0 %v1437_v0, %s1416_s26 }
  0x6a   :  { %803 = vrot.lane.b32.xlu1 %v1461_v4, %s1416_s26  ;;  %790 = vrot.lane.b32.xlu0 %v1466_v5, %s1416_s26 }
  0x6e   :  { %828 = vrot.lane.b32.xlu1 %v1454_v3, %s1417_s27  ;;  %815 = vrot.lane.b32.xlu0 %v1443_v1, %s1417_s27 }
  0x72   :  { %854 = vrot.lane.b32.xlu1 %v1449_v2, %s1417_s27  ;;  %841 = vrot.lane.b32.xlu0 %v1437_v0, %s1417_s27 }
  0x74   :  { %v149_v6 = vpop.permute.xlu1 %148   ;;  %v123_v7 = vpop.permute.xlu0 %122  }
  0x75   :  { %152 = vst.msk [vmem:[#allocation0 + $0x21] ss:$16 sm:$0x3] %vm4_vm0, %v149_v6   ;;  %154 = vst.msk [vmem:[#allocation0 + $0x41] ss:$16 sm:$0xc] %vm4_vm0, %v149_v6  }
  0x76   :  { %156 = vst.msk [vmem:[#allocation0 + $0x61] ss:$16 sm:$0x30] %vm4_vm0, %v149_v6   ;;  %158 = vst.msk [vmem:[#allocation0 + $0x81] ss:$16 sm:$0xc0] %vm4_vm0, %v149_v6   ;;  %880 = vrot.lane.b32.xlu1 %v1461_v4, %s1417_s27  ;;  %867 = vrot.lane.b32.xlu0 %v1466_v5, %s1417_s27 }
  0x77   :  { %126 = vst.msk [vmem:[#allocation0 + $0x1] ss:$16 sm:$0x3] %vm4_vm0, %v123_v7   ;;  %128 = vst.msk [vmem:[#allocation0 + $0x21] ss:$16 sm:$0xc] %vm4_vm0, %v123_v7  }
  0x78   :  { %130 = vst.msk [vmem:[#allocation0 + $0x41] ss:$16 sm:$0x30] %vm4_vm0, %v123_v7   ;;  %132 = vst.msk [vmem:[#allocation0 + $0x61] ss:$16 sm:$0xc0] %vm4_vm0, %v123_v7   ;;  %v162_v8 = vpop.permute.xlu1 %161   ;;  %v136_v9 = vpop.permute.xlu0 %135  }
  0x79   :  { %165 = vst.msk [vmem:[#allocation0 + $0x121] ss:$16 sm:$0x3] %vm4_vm0, %v162_v8   ;;  %167 = vst.msk [vmem:[#allocation0 + $0x141] ss:$16 sm:$0xc] %vm4_vm0, %v162_v8  }
  0x7a   :  { %169 = vst.msk [vmem:[#allocation0 + $0x161] ss:$16 sm:$0x30] %vm4_vm0, %v162_v8   ;;  %171 = vst.msk [vmem:[#allocation0 + $0x181] ss:$16 sm:$0xc0] %vm4_vm0, %v162_v8   ;;  %905 = vrot.lane.b32.xlu1 %v1454_v3, %s1418_s28  ;;  %892 = vrot.lane.b32.xlu0 %v1443_v1, %s1418_s28 }
  0x7b   :  { %139 = vst.msk [vmem:[#allocation0 + $0x101] ss:$16 sm:$0x3] %vm4_vm0, %v136_v9   ;;  %141 = vst.msk [vmem:[#allocation0 + $0x121] ss:$16 sm:$0xc] %vm4_vm0, %v136_v9  }
  0x7c   :  { %143 = vst.msk [vmem:[#allocation0 + $0x141] ss:$16 sm:$0x30] %vm4_vm0, %v136_v9   ;;  %145 = vst.msk [vmem:[#allocation0 + $0x161] ss:$16 sm:$0xc0] %vm4_vm0, %v136_v9   ;;  %v188_v10 = vpop.permute.xlu1 %187   ;;  %v175_v11 = vpop.permute.xlu0 %174  }
  0x7d   :  { %191 = vst.msk [vmem:[#allocation0 + $0x221] ss:$16 sm:$0x3] %vm4_vm0, %v188_v10   ;;  %193 = vst.msk [vmem:[#allocation0 + $0x241] ss:$16 sm:$0xc] %vm4_vm0, %v188_v10  }
  0x7e   :  { %195 = vst.msk [vmem:[#allocation0 + $0x261] ss:$16 sm:$0x30] %vm4_vm0, %v188_v10   ;;  %197 = vst.msk [vmem:[#allocation0 + $0x281] ss:$16 sm:$0xc0] %vm4_vm0, %v188_v10   ;;  %931 = vrot.lane.b32.xlu1 %v1449_v2, %s1418_s28  ;;  %918 = vrot.lane.b32.xlu0 %v1437_v0, %s1418_s28 }
  0x7f   :  { %178 = vst.msk [vmem:[#allocation0 + $0x201] ss:$16 sm:$0x3] %vm4_vm0, %v175_v11   ;;  %180 = vst.msk [vmem:[#allocation0 + $0x221] ss:$16 sm:$0xc] %vm4_vm0, %v175_v11  }
  0x80   :  { %182 = vst.msk [vmem:[#allocation0 + $0x241] ss:$16 sm:$0x30] %vm4_vm0, %v175_v11   ;;  %184 = vst.msk [vmem:[#allocation0 + $0x261] ss:$16 sm:$0xc0] %vm4_vm0, %v175_v11   ;;  %v213_v12 = vpop.permute.xlu1 %212   ;;  %v200_v13 = vpop.permute.xlu0 %199  }
  0x81   :  { %216 = vst.msk [vmem:[#allocation0 + $0x102] ss:$16 sm:$0x3] %vm4_vm0, %v213_v12   ;;  %218 = vst.msk [vmem:[#allocation0 + $0x122] ss:$16 sm:$0xc] %vm4_vm0, %v213_v12  }
  0x82   :  { %220 = vst.msk [vmem:[#allocation0 + $0x142] ss:$16 sm:$0x30] %vm4_vm0, %v213_v12   ;;  %222 = vst.msk [vmem:[#allocation0 + $0x162] ss:$16 sm:$0xc0] %vm4_vm0, %v213_v12   ;;  %957 = vrot.lane.b32.xlu1 %v1461_v4, %s1418_s28  ;;  %944 = vrot.lane.b32.xlu0 %v1466_v5, %s1418_s28 }
  0x83   :  { %203 = vst.msk [vmem:[#allocation0 + $0x2] ss:$16 sm:$0x3] %vm4_vm0, %v200_v13   ;;  %205 = vst.msk [vmem:[#allocation0 + $0x22] ss:$16 sm:$0xc] %vm4_vm0, %v200_v13  }
  0x84   :  { %207 = vst.msk [vmem:[#allocation0 + $0x42] ss:$16 sm:$0x30] %vm4_vm0, %v200_v13   ;;  %209 = vst.msk [vmem:[#allocation0 + $0x62] ss:$16 sm:$0xc0] %vm4_vm0, %v200_v13   ;;  %v239_v14 = vpop.permute.xlu1 %238   ;;  %v226_v15 = vpop.permute.xlu0 %225  }
  0x85   :  { %242 = vst.msk [vmem:[#allocation0 + $0x122] ss:$16 sm:$0x3] %vm4_vm0, %v239_v14   ;;  %244 = vst.msk [vmem:[#allocation0 + $0x142] ss:$16 sm:$0xc] %vm4_vm0, %v239_v14  }
  0x86   :  { %246 = vst.msk [vmem:[#allocation0 + $0x162] ss:$16 sm:$0x30] %vm4_vm0, %v239_v14   ;;  %248 = vst.msk [vmem:[#allocation0 + $0x182] ss:$16 sm:$0xc0] %vm4_vm0, %v239_v14   ;;  %982 = vrot.lane.b32.xlu1 %v1454_v3, %s1419_s29  ;;  %969 = vrot.lane.b32.xlu0 %v1443_v1, %s1419_s29 }
  0x87   :  { %229 = vst.msk [vmem:[#allocation0 + $0x22] ss:$16 sm:$0x3] %vm4_vm0, %v226_v15   ;;  %231 = vst.msk [vmem:[#allocation0 + $0x42] ss:$16 sm:$0xc] %vm4_vm0, %v226_v15  }
  0x88   :  { %233 = vst.msk [vmem:[#allocation0 + $0x62] ss:$16 sm:$0x30] %vm4_vm0, %v226_v15   ;;  %235 = vst.msk [vmem:[#allocation0 + $0x82] ss:$16 sm:$0xc0] %vm4_vm0, %v226_v15   ;;  %v265_v16 = vpop.permute.xlu1 %264   ;;  %v252_v17 = vpop.permute.xlu0 %251  }
  0x89   :  { %268 = vst.msk [vmem:[#allocation0 + $0x222] ss:$16 sm:$0x3] %vm4_vm0, %v265_v16   ;;  %270 = vst.msk [vmem:[#allocation0 + $0x242] ss:$16 sm:$0xc] %vm4_vm0, %v265_v16  }
  0x8a   :  { %272 = vst.msk [vmem:[#allocation0 + $0x262] ss:$16 sm:$0x30] %vm4_vm0, %v265_v16   ;;  %274 = vst.msk [vmem:[#allocation0 + $0x282] ss:$16 sm:$0xc0] %vm4_vm0, %v265_v16   ;;  %1008 = vrot.lane.b32.xlu1 %v1449_v2, %s1419_s29  ;;  %995 = vrot.lane.b32.xlu0 %v1437_v0, %s1419_s29 }
  0x8b   :  { %255 = vst.msk [vmem:[#allocation0 + $0x202] ss:$16 sm:$0x3] %vm4_vm0, %v252_v17   ;;  %257 = vst.msk [vmem:[#allocation0 + $0x222] ss:$16 sm:$0xc] %vm4_vm0, %v252_v17  }
  0x8c   :  { %259 = vst.msk [vmem:[#allocation0 + $0x242] ss:$16 sm:$0x30] %vm4_vm0, %v252_v17   ;;  %261 = vst.msk [vmem:[#allocation0 + $0x262] ss:$16 sm:$0xc0] %vm4_vm0, %v252_v17   ;;  %v290_v18 = vpop.permute.xlu1 %289   ;;  %v277_v19 = vpop.permute.xlu0 %276  }
  0x8d   :  { %293 = vst.msk [vmem:[#allocation0 + $0x103] ss:$16 sm:$0x3] %vm4_vm0, %v290_v18   ;;  %295 = vst.msk [vmem:[#allocation0 + $0x123] ss:$16 sm:$0xc] %vm4_vm0, %v290_v18  }
  0x8e   :  { %297 = vst.msk [vmem:[#allocation0 + $0x143] ss:$16 sm:$0x30] %vm4_vm0, %v290_v18   ;;  %299 = vst.msk [vmem:[#allocation0 + $0x163] ss:$16 sm:$0xc0] %vm4_vm0, %v290_v18   ;;  %1034 = vrot.lane.b32.xlu1 %v1461_v4, %s1419_s29  ;;  %1021 = vrot.lane.b32.xlu0 %v1466_v5, %s1419_s29 }
  0x8f   :  { %280 = vst.msk [vmem:[#allocation0 + $0x3] ss:$16 sm:$0x3] %vm4_vm0, %v277_v19   ;;  %282 = vst.msk [vmem:[#allocation0 + $0x23] ss:$16 sm:$0xc] %vm4_vm0, %v277_v19  }
  0x90   :  { %284 = vst.msk [vmem:[#allocation0 + $0x43] ss:$16 sm:$0x30] %vm4_vm0, %v277_v19   ;;  %286 = vst.msk [vmem:[#allocation0 + $0x63] ss:$16 sm:$0xc0] %vm4_vm0, %v277_v19   ;;  %v316_v20 = vpop.permute.xlu1 %315   ;;  %v303_v21 = vpop.permute.xlu0 %302  }
  0x91   :  { %319 = vst.msk [vmem:[#allocation0 + $0x123] ss:$16 sm:$0x3] %vm4_vm0, %v316_v20   ;;  %321 = vst.msk [vmem:[#allocation0 + $0x143] ss:$16 sm:$0xc] %vm4_vm0, %v316_v20  }
  0x92   :  { %323 = vst.msk [vmem:[#allocation0 + $0x163] ss:$16 sm:$0x30] %vm4_vm0, %v316_v20   ;;  %325 = vst.msk [vmem:[#allocation0 + $0x183] ss:$16 sm:$0xc0] %vm4_vm0, %v316_v20   ;;  %1059 = vrot.lane.b32.xlu1 %v1454_v3, %s1420_s30  ;;  %1046 = vrot.lane.b32.xlu0 %v1443_v1, %s1420_s30 }
  0x93   :  { %306 = vst.msk [vmem:[#allocation0 + $0x23] ss:$16 sm:$0x3] %vm4_vm0, %v303_v21   ;;  %308 = vst.msk [vmem:[#allocation0 + $0x43] ss:$16 sm:$0xc] %vm4_vm0, %v303_v21  }
  0x94   :  { %310 = vst.msk [vmem:[#allocation0 + $0x63] ss:$16 sm:$0x30] %vm4_vm0, %v303_v21   ;;  %312 = vst.msk [vmem:[#allocation0 + $0x83] ss:$16 sm:$0xc0] %vm4_vm0, %v303_v21   ;;  %v342_v22 = vpop.permute.xlu1 %341   ;;  %v329_v23 = vpop.permute.xlu0 %328  }
  0x95   :  { %345 = vst.msk [vmem:[#allocation0 + $0x223] ss:$16 sm:$0x3] %vm4_vm0, %v342_v22   ;;  %347 = vst.msk [vmem:[#allocation0 + $0x243] ss:$16 sm:$0xc] %vm4_vm0, %v342_v22  }
  0x96   :  { %349 = vst.msk [vmem:[#allocation0 + $0x263] ss:$16 sm:$0x30] %vm4_vm0, %v342_v22   ;;  %351 = vst.msk [vmem:[#allocation0 + $0x283] ss:$16 sm:$0xc0] %vm4_vm0, %v342_v22   ;;  %1085 = vrot.lane.b32.xlu1 %v1449_v2, %s1420_s30  ;;  %1072 = vrot.lane.b32.xlu0 %v1437_v0, %s1420_s30 }
  0x97   :  { %332 = vst.msk [vmem:[#allocation0 + $0x203] ss:$16 sm:$0x3] %vm4_vm0, %v329_v23   ;;  %334 = vst.msk [vmem:[#allocation0 + $0x223] ss:$16 sm:$0xc] %vm4_vm0, %v329_v23  }
  0x98   :  { %336 = vst.msk [vmem:[#allocation0 + $0x243] ss:$16 sm:$0x30] %vm4_vm0, %v329_v23   ;;  %338 = vst.msk [vmem:[#allocation0 + $0x263] ss:$16 sm:$0xc0] %vm4_vm0, %v329_v23   ;;  %v367_v24 = vpop.permute.xlu1 %366   ;;  %v354_v25 = vpop.permute.xlu0 %353  }
  0x99   :  { %370 = vst.msk [vmem:[#allocation0 + $0x104] ss:$16 sm:$0x3] %vm4_vm0, %v367_v24   ;;  %372 = vst.msk [vmem:[#allocation0 + $0x124] ss:$16 sm:$0xc] %vm4_vm0, %v367_v24  }
  0x9a   :  { %374 = vst.msk [vmem:[#allocation0 + $0x144] ss:$16 sm:$0x30] %vm4_vm0, %v367_v24   ;;  %376 = vst.msk [vmem:[#allocation0 + $0x164] ss:$16 sm:$0xc0] %vm4_vm0, %v367_v24   ;;  %1111 = vrot.lane.b32.xlu1 %v1461_v4, %s1420_s30  ;;  %1098 = vrot.lane.b32.xlu0 %v1466_v5, %s1420_s30 }
  0x9b   :  { %357 = vst.msk [vmem:[#allocation0 + $0x4] ss:$16 sm:$0x3] %vm4_vm0, %v354_v25   ;;  %359 = vst.msk [vmem:[#allocation0 + $0x24] ss:$16 sm:$0xc] %vm4_vm0, %v354_v25  }
  0x9c   :  { %361 = vst.msk [vmem:[#allocation0 + $0x44] ss:$16 sm:$0x30] %vm4_vm0, %v354_v25   ;;  %363 = vst.msk [vmem:[#allocation0 + $0x64] ss:$16 sm:$0xc0] %vm4_vm0, %v354_v25   ;;  %v393_v26 = vpop.permute.xlu1 %392   ;;  %v380_v27 = vpop.permute.xlu0 %379  }
  0x9d   :  { %396 = vst.msk [vmem:[#allocation0 + $0x124] ss:$16 sm:$0x3] %vm4_vm0, %v393_v26   ;;  %398 = vst.msk [vmem:[#allocation0 + $0x144] ss:$16 sm:$0xc] %vm4_vm0, %v393_v26  }
  0x9e   :  { %400 = vst.msk [vmem:[#allocation0 + $0x164] ss:$16 sm:$0x30] %vm4_vm0, %v393_v26   ;;  %402 = vst.msk [vmem:[#allocation0 + $0x184] ss:$16 sm:$0xc0] %vm4_vm0, %v393_v26   ;;  %1136 = vrot.lane.b32.xlu1 %v1454_v3, %s1421_s2  ;;  %1123 = vrot.lane.b32.xlu0 %v1443_v1, %s1421_s2 }
  0x9f   :  { %383 = vst.msk [vmem:[#allocation0 + $0x24] ss:$16 sm:$0x3] %vm4_vm0, %v380_v27   ;;  %385 = vst.msk [vmem:[#allocation0 + $0x44] ss:$16 sm:$0xc] %vm4_vm0, %v380_v27  }
  0xa0   :  { %387 = vst.msk [vmem:[#allocation0 + $0x64] ss:$16 sm:$0x30] %vm4_vm0, %v380_v27   ;;  %389 = vst.msk [vmem:[#allocation0 + $0x84] ss:$16 sm:$0xc0] %vm4_vm0, %v380_v27   ;;  %v419_v28 = vpop.permute.xlu1 %418   ;;  %v406_v29 = vpop.permute.xlu0 %405  }
  0xa1   :  { %422 = vst.msk [vmem:[#allocation0 + $0x224] ss:$16 sm:$0x3] %vm4_vm0, %v419_v28   ;;  %424 = vst.msk [vmem:[#allocation0 + $0x244] ss:$16 sm:$0xc] %vm4_vm0, %v419_v28  }
  0xa2   :  { %426 = vst.msk [vmem:[#allocation0 + $0x264] ss:$16 sm:$0x30] %vm4_vm0, %v419_v28   ;;  %428 = vst.msk [vmem:[#allocation0 + $0x284] ss:$16 sm:$0xc0] %vm4_vm0, %v419_v28   ;;  %1162 = vrot.lane.b32.xlu1 %v1449_v2, %s1421_s2  ;;  %1149 = vrot.lane.b32.xlu0 %v1437_v0, %s1421_s2 }
  0xa3   :  { %409 = vst.msk [vmem:[#allocation0 + $0x204] ss:$16 sm:$0x3] %vm4_vm0, %v406_v29   ;;  %411 = vst.msk [vmem:[#allocation0 + $0x224] ss:$16 sm:$0xc] %vm4_vm0, %v406_v29  }
  0xa4   :  { %413 = vst.msk [vmem:[#allocation0 + $0x244] ss:$16 sm:$0x30] %vm4_vm0, %v406_v29   ;;  %415 = vst.msk [vmem:[#allocation0 + $0x264] ss:$16 sm:$0xc0] %vm4_vm0, %v406_v29   ;;  %v444_v30 = vpop.permute.xlu1 %443   ;;  %v431_v31 = vpop.permute.xlu0 %430  }
  0xa5   :  { %447 = vst.msk [vmem:[#allocation0 + $0x105] ss:$16 sm:$0x3] %vm4_vm0, %v444_v30   ;;  %449 = vst.msk [vmem:[#allocation0 + $0x125] ss:$16 sm:$0xc] %vm4_vm0, %v444_v30  }
  0xa6   :  { %451 = vst.msk [vmem:[#allocation0 + $0x145] ss:$16 sm:$0x30] %vm4_vm0, %v444_v30   ;;  %453 = vst.msk [vmem:[#allocation0 + $0x165] ss:$16 sm:$0xc0] %vm4_vm0, %v444_v30   ;;  %1188 = vrot.lane.b32.xlu1 %v1461_v4, %s1421_s2  ;;  %1175 = vrot.lane.b32.xlu0 %v1466_v5, %s1421_s2 }
  0xa7   :  { %434 = vst.msk [vmem:[#allocation0 + $0x5] ss:$16 sm:$0x3] %vm4_vm0, %v431_v31   ;;  %436 = vst.msk [vmem:[#allocation0 + $0x25] ss:$16 sm:$0xc] %vm4_vm0, %v431_v31  }
  0xa8   :  { %438 = vst.msk [vmem:[#allocation0 + $0x45] ss:$16 sm:$0x30] %vm4_vm0, %v431_v31   ;;  %440 = vst.msk [vmem:[#allocation0 + $0x65] ss:$16 sm:$0xc0] %vm4_vm0, %v431_v31   ;;  %v470_v40 = vpop.permute.xlu1 %469   ;;  %v457_v41 = vpop.permute.xlu0 %456  }
  0xa9   :  { %473 = vst.msk [vmem:[#allocation0 + $0x125] ss:$16 sm:$0x3] %vm4_vm0, %v470_v40   ;;  %475 = vst.msk [vmem:[#allocation0 + $0x145] ss:$16 sm:$0xc] %vm4_vm0, %v470_v40  }
  0xaa   :  { %477 = vst.msk [vmem:[#allocation0 + $0x165] ss:$16 sm:$0x30] %vm4_vm0, %v470_v40   ;;  %479 = vst.msk [vmem:[#allocation0 + $0x185] ss:$16 sm:$0xc0] %vm4_vm0, %v470_v40   ;;  %1213 = vrot.lane.b32.xlu1 %v1454_v3, %s1422_s0  ;;  %1200 = vrot.lane.b32.xlu0 %v1443_v1, %s1422_s0 }
  0xab   :  { %460 = vst.msk [vmem:[#allocation0 + $0x25] ss:$16 sm:$0x3] %vm4_vm0, %v457_v41   ;;  %462 = vst.msk [vmem:[#allocation0 + $0x45] ss:$16 sm:$0xc] %vm4_vm0, %v457_v41  }
  0xac   :  { %464 = vst.msk [vmem:[#allocation0 + $0x65] ss:$16 sm:$0x30] %vm4_vm0, %v457_v41   ;;  %466 = vst.msk [vmem:[#allocation0 + $0x85] ss:$16 sm:$0xc0] %vm4_vm0, %v457_v41   ;;  %v496_v42 = vpop.permute.xlu1 %495   ;;  %v483_v43 = vpop.permute.xlu0 %482  }
  0xad   :  { %499 = vst.msk [vmem:[#allocation0 + $0x225] ss:$16 sm:$0x3] %vm4_vm0, %v496_v42   ;;  %501 = vst.msk [vmem:[#allocation0 + $0x245] ss:$16 sm:$0xc] %vm4_vm0, %v496_v42  }
  0xae   :  { %503 = vst.msk [vmem:[#allocation0 + $0x265] ss:$16 sm:$0x30] %vm4_vm0, %v496_v42   ;;  %505 = vst.msk [vmem:[#allocation0 + $0x285] ss:$16 sm:$0xc0] %vm4_vm0, %v496_v42   ;;  %1239 = vrot.lane.b32.xlu1 %v1449_v2, %s1422_s0  ;;  %1226 = vrot.lane.b32.xlu0 %v1437_v0, %s1422_s0 }
  0xaf   :  { %486 = vst.msk [vmem:[#allocation0 + $0x205] ss:$16 sm:$0x3] %vm4_vm0, %v483_v43   ;;  %488 = vst.msk [vmem:[#allocation0 + $0x225] ss:$16 sm:$0xc] %vm4_vm0, %v483_v43  }
  0xb0   :  { %490 = vst.msk [vmem:[#allocation0 + $0x245] ss:$16 sm:$0x30] %vm4_vm0, %v483_v43   ;;  %492 = vst.msk [vmem:[#allocation0 + $0x265] ss:$16 sm:$0xc0] %vm4_vm0, %v483_v43   ;;  %v521_v44 = vpop.permute.xlu1 %520   ;;  %v508_v45 = vpop.permute.xlu0 %507  }
  0xb1   :  { %524 = vst.msk [vmem:[#allocation0 + $0x106] ss:$16 sm:$0x3] %vm4_vm0, %v521_v44   ;;  %526 = vst.msk [vmem:[#allocation0 + $0x126] ss:$16 sm:$0xc] %vm4_vm0, %v521_v44  }
  0xb2   :  { %528 = vst.msk [vmem:[#allocation0 + $0x146] ss:$16 sm:$0x30] %vm4_vm0, %v521_v44   ;;  %530 = vst.msk [vmem:[#allocation0 + $0x166] ss:$16 sm:$0xc0] %vm4_vm0, %v521_v44   ;;  %1265 = vrot.lane.b32.xlu1 %v1461_v4, %s1422_s0  ;;  %1252 = vrot.lane.b32.xlu0 %v1466_v5, %s1422_s0 }
  0xb3   :  { %511 = vst.msk [vmem:[#allocation0 + $0x6] ss:$16 sm:$0x3] %vm4_vm0, %v508_v45   ;;  %513 = vst.msk [vmem:[#allocation0 + $0x26] ss:$16 sm:$0xc] %vm4_vm0, %v508_v45  }
  0xb4   :  { %515 = vst.msk [vmem:[#allocation0 + $0x46] ss:$16 sm:$0x30] %vm4_vm0, %v508_v45   ;;  %517 = vst.msk [vmem:[#allocation0 + $0x66] ss:$16 sm:$0xc0] %vm4_vm0, %v508_v45   ;;  %v547_v46 = vpop.permute.xlu1 %546   ;;  %v534_v47 = vpop.permute.xlu0 %533  }
  0xb5   :  { %550 = vst.msk [vmem:[#allocation0 + $0x126] ss:$16 sm:$0x3] %vm4_vm0, %v547_v46   ;;  %552 = vst.msk [vmem:[#allocation0 + $0x146] ss:$16 sm:$0xc] %vm4_vm0, %v547_v46  }
  0xb6   :  { %554 = vst.msk [vmem:[#allocation0 + $0x166] ss:$16 sm:$0x30] %vm4_vm0, %v547_v46   ;;  %556 = vst.msk [vmem:[#allocation0 + $0x186] ss:$16 sm:$0xc0] %vm4_vm0, %v547_v46  }
  0xb7   :  { %537 = vst.msk [vmem:[#allocation0 + $0x26] ss:$16 sm:$0x3] %vm4_vm0, %v534_v47   ;;  %539 = vst.msk [vmem:[#allocation0 + $0x46] ss:$16 sm:$0xc] %vm4_vm0, %v534_v47  }
  0xb8   :  { %541 = vst.msk [vmem:[#allocation0 + $0x66] ss:$16 sm:$0x30] %vm4_vm0, %v534_v47   ;;  %543 = vst.msk [vmem:[#allocation0 + $0x86] ss:$16 sm:$0xc0] %vm4_vm0, %v534_v47   ;;  %v573_v48 = vpop.permute.xlu1 %572   ;;  %v560_v49 = vpop.permute.xlu0 %559  }
  0xb9   :  { %576 = vst.msk [vmem:[#allocation0 + $0x226] ss:$16 sm:$0x3] %vm4_vm0, %v573_v48   ;;  %578 = vst.msk [vmem:[#allocation0 + $0x246] ss:$16 sm:$0xc] %vm4_vm0, %v573_v48  }
  0xba   :  { %580 = vst.msk [vmem:[#allocation0 + $0x266] ss:$16 sm:$0x30] %vm4_vm0, %v573_v48   ;;  %582 = vst.msk [vmem:[#allocation0 + $0x286] ss:$16 sm:$0xc0] %vm4_vm0, %v573_v48  }
  0xbb   :  { %563 = vst.msk [vmem:[#allocation0 + $0x206] ss:$16 sm:$0x3] %vm4_vm0, %v560_v49   ;;  %565 = vst.msk [vmem:[#allocation0 + $0x226] ss:$16 sm:$0xc] %vm4_vm0, %v560_v49  }
  0xbc   :  { %567 = vst.msk [vmem:[#allocation0 + $0x246] ss:$16 sm:$0x30] %vm4_vm0, %v560_v49   ;;  %569 = vst.msk [vmem:[#allocation0 + $0x266] ss:$16 sm:$0xc0] %vm4_vm0, %v560_v49   ;;  %v598_v50 = vpop.permute.xlu1 %597   ;;  %v585_v51 = vpop.permute.xlu0 %584  }
  0xbd   :  { %601 = vst.msk [vmem:[#allocation0 + $0x107] ss:$16 sm:$0x3] %vm4_vm0, %v598_v50   ;;  %603 = vst.msk [vmem:[#allocation0 + $0x127] ss:$16 sm:$0xc] %vm4_vm0, %v598_v50  }
  0xbe   :  { %605 = vst.msk [vmem:[#allocation0 + $0x147] ss:$16 sm:$0x30] %vm4_vm0, %v598_v50   ;;  %607 = vst.msk [vmem:[#allocation0 + $0x167] ss:$16 sm:$0xc0] %vm4_vm0, %v598_v50  }
  0xbf   :  { %588 = vst.msk [vmem:[#allocation0 + $0x7] ss:$16 sm:$0x3] %vm4_vm0, %v585_v51   ;;  %590 = vst.msk [vmem:[#allocation0 + $0x27] ss:$16 sm:$0xc] %vm4_vm0, %v585_v51  }
  0xc0   :  { %592 = vst.msk [vmem:[#allocation0 + $0x47] ss:$16 sm:$0x30] %vm4_vm0, %v585_v51   ;;  %594 = vst.msk [vmem:[#allocation0 + $0x67] ss:$16 sm:$0xc0] %vm4_vm0, %v585_v51   ;;  %v624_v52 = vpop.permute.xlu1 %623   ;;  %v611_v53 = vpop.permute.xlu0 %610  }
  0xc1   :  { %627 = vst.msk [vmem:[#allocation0 + $0x127] ss:$16 sm:$0x3] %vm4_vm0, %v624_v52   ;;  %629 = vst.msk [vmem:[#allocation0 + $0x147] ss:$16 sm:$0xc] %vm4_vm0, %v624_v52  }
  0xc2   :  { %631 = vst.msk [vmem:[#allocation0 + $0x167] ss:$16 sm:$0x30] %vm4_vm0, %v624_v52   ;;  %633 = vst.msk [vmem:[#allocation0 + $0x187] ss:$16 sm:$0xc0] %vm4_vm0, %v624_v52  }
  0xc3   :  { %614 = vst.msk [vmem:[#allocation0 + $0x27] ss:$16 sm:$0x3] %vm4_vm0, %v611_v53   ;;  %616 = vst.msk [vmem:[#allocation0 + $0x47] ss:$16 sm:$0xc] %vm4_vm0, %v611_v53  }
  0xc4   :  { %618 = vst.msk [vmem:[#allocation0 + $0x67] ss:$16 sm:$0x30] %vm4_vm0, %v611_v53   ;;  %620 = vst.msk [vmem:[#allocation0 + $0x87] ss:$16 sm:$0xc0] %vm4_vm0, %v611_v53   ;;  %v650_v54 = vpop.permute.xlu1 %649   ;;  %v637_v55 = vpop.permute.xlu0 %636  }
  0xc5   :  { %653 = vst.msk [vmem:[#allocation0 + $0x227] ss:$16 sm:$0x3] %vm4_vm0, %v650_v54   ;;  %655 = vst.msk [vmem:[#allocation0 + $0x247] ss:$16 sm:$0xc] %vm4_vm0, %v650_v54  }
  0xc6   :  { %657 = vst.msk [vmem:[#allocation0 + $0x267] ss:$16 sm:$0x30] %vm4_vm0, %v650_v54   ;;  %659 = vst.msk [vmem:[#allocation0 + $0x287] ss:$16 sm:$0xc0] %vm4_vm0, %v650_v54  }
  0xc7   :  { %640 = vst.msk [vmem:[#allocation0 + $0x207] ss:$16 sm:$0x3] %vm4_vm0, %v637_v55   ;;  %642 = vst.msk [vmem:[#allocation0 + $0x227] ss:$16 sm:$0xc] %vm4_vm0, %v637_v55  }
  0xc8   :  { %644 = vst.msk [vmem:[#allocation0 + $0x247] ss:$16 sm:$0x30] %vm4_vm0, %v637_v55   ;;  %646 = vst.msk [vmem:[#allocation0 + $0x267] ss:$16 sm:$0xc0] %vm4_vm0, %v637_v55   ;;  %v675_v56 = vpop.permute.xlu1 %674   ;;  %v662_v57 = vpop.permute.xlu0 %661  }
  0xc9   :  { %678 = vst.msk [vmem:[#allocation0 + $0x108] ss:$16 sm:$0x3] %vm4_vm0, %v675_v56   ;;  %680 = vst.msk [vmem:[#allocation0 + $0x128] ss:$16 sm:$0xc] %vm4_vm0, %v675_v56  }
  0xca   :  { %682 = vst.msk [vmem:[#allocation0 + $0x148] ss:$16 sm:$0x30] %vm4_vm0, %v675_v56   ;;  %684 = vst.msk [vmem:[#allocation0 + $0x168] ss:$16 sm:$0xc0] %vm4_vm0, %v675_v56  }
  0xcb   :  { %665 = vst.msk [vmem:[#allocation0 + $0x8] ss:$16 sm:$0x3] %vm4_vm0, %v662_v57   ;;  %667 = vst.msk [vmem:[#allocation0 + $0x28] ss:$16 sm:$0xc] %vm4_vm0, %v662_v57  }
  0xcc   :  { %669 = vst.msk [vmem:[#allocation0 + $0x48] ss:$16 sm:$0x30] %vm4_vm0, %v662_v57   ;;  %671 = vst.msk [vmem:[#allocation0 + $0x68] ss:$16 sm:$0xc0] %vm4_vm0, %v662_v57   ;;  %v701_v58 = vpop.permute.xlu1 %700   ;;  %v688_v59 = vpop.permute.xlu0 %687  }
  0xcd   :  { %704 = vst.msk [vmem:[#allocation0 + $0x128] ss:$16 sm:$0x3] %vm4_vm0, %v701_v58   ;;  %706 = vst.msk [vmem:[#allocation0 + $0x148] ss:$16 sm:$0xc] %vm4_vm0, %v701_v58  }
  0xce   :  { %708 = vst.msk [vmem:[#allocation0 + $0x168] ss:$16 sm:$0x30] %vm4_vm0, %v701_v58   ;;  %710 = vst.msk [vmem:[#allocation0 + $0x188] ss:$16 sm:$0xc0] %vm4_vm0, %v701_v58  }
  0xcf   :  { %691 = vst.msk [vmem:[#allocation0 + $0x28] ss:$16 sm:$0x3] %vm4_vm0, %v688_v59   ;;  %693 = vst.msk [vmem:[#allocation0 + $0x48] ss:$16 sm:$0xc] %vm4_vm0, %v688_v59  }
  0xd0   :  { %695 = vst.msk [vmem:[#allocation0 + $0x68] ss:$16 sm:$0x30] %vm4_vm0, %v688_v59   ;;  %697 = vst.msk [vmem:[#allocation0 + $0x88] ss:$16 sm:$0xc0] %vm4_vm0, %v688_v59   ;;  %v727_v60 = vpop.permute.xlu1 %726   ;;  %v714_v61 = vpop.permute.xlu0 %713  }
  0xd1   :  { %730 = vst.msk [vmem:[#allocation0 + $0x228] ss:$16 sm:$0x3] %vm4_vm0, %v727_v60   ;;  %732 = vst.msk [vmem:[#allocation0 + $0x248] ss:$16 sm:$0xc] %vm4_vm0, %v727_v60  }
  0xd2   :  { %734 = vst.msk [vmem:[#allocation0 + $0x268] ss:$16 sm:$0x30] %vm4_vm0, %v727_v60   ;;  %736 = vst.msk [vmem:[#allocation0 + $0x288] ss:$16 sm:$0xc0] %vm4_vm0, %v727_v60  }
  0xd3   :  { %717 = vst.msk [vmem:[#allocation0 + $0x208] ss:$16 sm:$0x3] %vm4_vm0, %v714_v61   ;;  %719 = vst.msk [vmem:[#allocation0 + $0x228] ss:$16 sm:$0xc] %vm4_vm0, %v714_v61  }
  0xd4   :  { %721 = vst.msk [vmem:[#allocation0 + $0x248] ss:$16 sm:$0x30] %vm4_vm0, %v714_v61   ;;  %723 = vst.msk [vmem:[#allocation0 + $0x268] ss:$16 sm:$0xc0] %vm4_vm0, %v714_v61   ;;  %v752_v62 = vpop.permute.xlu1 %751   ;;  %v739_v63 = vpop.permute.xlu0 %738  }
  0xd5   :  { %755 = vst.msk [vmem:[#allocation0 + $0x109] ss:$16 sm:$0x3] %vm4_vm0, %v752_v62   ;;  %757 = vst.msk [vmem:[#allocation0 + $0x129] ss:$16 sm:$0xc] %vm4_vm0, %v752_v62  }
  0xd6   :  { %759 = vst.msk [vmem:[#allocation0 + $0x149] ss:$16 sm:$0x30] %vm4_vm0, %v752_v62   ;;  %761 = vst.msk [vmem:[#allocation0 + $0x169] ss:$16 sm:$0xc0] %vm4_vm0, %v752_v62  }
  0xd7   :  { %742 = vst.msk [vmem:[#allocation0 + $0x9] ss:$16 sm:$0x3] %vm4_vm0, %v739_v63   ;;  %744 = vst.msk [vmem:[#allocation0 + $0x29] ss:$16 sm:$0xc] %vm4_vm0, %v739_v63  }
  0xd8   :  { %746 = vst.msk [vmem:[#allocation0 + $0x49] ss:$16 sm:$0x30] %vm4_vm0, %v739_v63   ;;  %748 = vst.msk [vmem:[#allocation0 + $0x69] ss:$16 sm:$0xc0] %vm4_vm0, %v739_v63   ;;  %v778_v0 = vpop.permute.xlu1 %777   ;;  %v765_v1 = vpop.permute.xlu0 %764  }
  0xd9   :  { %781 = vst.msk [vmem:[#allocation0 + $0x129] ss:$16 sm:$0x3] %vm4_vm0, %v778_v0   ;;  %783 = vst.msk [vmem:[#allocation0 + $0x149] ss:$16 sm:$0xc] %vm4_vm0, %v778_v0  }
  0xda   :  { %785 = vst.msk [vmem:[#allocation0 + $0x169] ss:$16 sm:$0x30] %vm4_vm0, %v778_v0   ;;  %787 = vst.msk [vmem:[#allocation0 + $0x189] ss:$16 sm:$0xc0] %vm4_vm0, %v778_v0  }
  0xdb   :  { %768 = vst.msk [vmem:[#allocation0 + $0x29] ss:$16 sm:$0x3] %vm4_vm0, %v765_v1   ;;  %770 = vst.msk [vmem:[#allocation0 + $0x49] ss:$16 sm:$0xc] %vm4_vm0, %v765_v1  }
  0xdc   :  { %772 = vst.msk [vmem:[#allocation0 + $0x69] ss:$16 sm:$0x30] %vm4_vm0, %v765_v1   ;;  %774 = vst.msk [vmem:[#allocation0 + $0x89] ss:$16 sm:$0xc0] %vm4_vm0, %v765_v1   ;;  %v804_v2 = vpop.permute.xlu1 %803   ;;  %v791_v3 = vpop.permute.xlu0 %790  }
  0xdd   :  { %807 = vst.msk [vmem:[#allocation0 + $0x229] ss:$16 sm:$0x3] %vm4_vm0, %v804_v2   ;;  %809 = vst.msk [vmem:[#allocation0 + $0x249] ss:$16 sm:$0xc] %vm4_vm0, %v804_v2  }
  0xde   :  { %811 = vst.msk [vmem:[#allocation0 + $0x269] ss:$16 sm:$0x30] %vm4_vm0, %v804_v2   ;;  %813 = vst.msk [vmem:[#allocation0 + $0x289] ss:$16 sm:$0xc0] %vm4_vm0, %v804_v2  }
  0xdf   :  { %794 = vst.msk [vmem:[#allocation0 + $0x209] ss:$16 sm:$0x3] %vm4_vm0, %v791_v3   ;;  %796 = vst.msk [vmem:[#allocation0 + $0x229] ss:$16 sm:$0xc] %vm4_vm0, %v791_v3  }
  0xe0   :  { %798 = vst.msk [vmem:[#allocation0 + $0x249] ss:$16 sm:$0x30] %vm4_vm0, %v791_v3   ;;  %800 = vst.msk [vmem:[#allocation0 + $0x269] ss:$16 sm:$0xc0] %vm4_vm0, %v791_v3   ;;  %v829_v4 = vpop.permute.xlu1 %828   ;;  %v816_v5 = vpop.permute.xlu0 %815  }
  0xe1   :  { %832 = vst.msk [vmem:[#allocation0 + $0x10a] ss:$16 sm:$0x3] %vm4_vm0, %v829_v4   ;;  %834 = vst.msk [vmem:[#allocation0 + $0x12a] ss:$16 sm:$0xc] %vm4_vm0, %v829_v4  }
  0xe2   :  { %836 = vst.msk [vmem:[#allocation0 + $0x14a] ss:$16 sm:$0x30] %vm4_vm0, %v829_v4   ;;  %838 = vst.msk [vmem:[#allocation0 + $0x16a] ss:$16 sm:$0xc0] %vm4_vm0, %v829_v4  }
  0xe3   :  { %819 = vst.msk [vmem:[#allocation0 + $0xa] ss:$16 sm:$0x3] %vm4_vm0, %v816_v5   ;;  %821 = vst.msk [vmem:[#allocation0 + $0x2a] ss:$16 sm:$0xc] %vm4_vm0, %v816_v5  }
  0xe4   :  { %823 = vst.msk [vmem:[#allocation0 + $0x4a] ss:$16 sm:$0x30] %vm4_vm0, %v816_v5   ;;  %825 = vst.msk [vmem:[#allocation0 + $0x6a] ss:$16 sm:$0xc0] %vm4_vm0, %v816_v5   ;;  %v855_v6 = vpop.permute.xlu1 %854   ;;  %v842_v7 = vpop.permute.xlu0 %841  }
  0xe5   :  { %858 = vst.msk [vmem:[#allocation0 + $0x12a] ss:$16 sm:$0x3] %vm4_vm0, %v855_v6   ;;  %860 = vst.msk [vmem:[#allocation0 + $0x14a] ss:$16 sm:$0xc] %vm4_vm0, %v855_v6  }
  0xe6   :  { %862 = vst.msk [vmem:[#allocation0 + $0x16a] ss:$16 sm:$0x30] %vm4_vm0, %v855_v6   ;;  %864 = vst.msk [vmem:[#allocation0 + $0x18a] ss:$16 sm:$0xc0] %vm4_vm0, %v855_v6  }
  0xe7   :  { %845 = vst.msk [vmem:[#allocation0 + $0x2a] ss:$16 sm:$0x3] %vm4_vm0, %v842_v7   ;;  %847 = vst.msk [vmem:[#allocation0 + $0x4a] ss:$16 sm:$0xc] %vm4_vm0, %v842_v7  }
  0xe8   :  { %849 = vst.msk [vmem:[#allocation0 + $0x6a] ss:$16 sm:$0x30] %vm4_vm0, %v842_v7   ;;  %851 = vst.msk [vmem:[#allocation0 + $0x8a] ss:$16 sm:$0xc0] %vm4_vm0, %v842_v7   ;;  %v881_v8 = vpop.permute.xlu1 %880   ;;  %v868_v9 = vpop.permute.xlu0 %867  }
  0xe9   :  { %884 = vst.msk [vmem:[#allocation0 + $0x22a] ss:$16 sm:$0x3] %vm4_vm0, %v881_v8   ;;  %886 = vst.msk [vmem:[#allocation0 + $0x24a] ss:$16 sm:$0xc] %vm4_vm0, %v881_v8  }
  0xea   :  { %888 = vst.msk [vmem:[#allocation0 + $0x26a] ss:$16 sm:$0x30] %vm4_vm0, %v881_v8   ;;  %890 = vst.msk [vmem:[#allocation0 + $0x28a] ss:$16 sm:$0xc0] %vm4_vm0, %v881_v8  }
  0xeb   :  { %871 = vst.msk [vmem:[#allocation0 + $0x20a] ss:$16 sm:$0x3] %vm4_vm0, %v868_v9   ;;  %873 = vst.msk [vmem:[#allocation0 + $0x22a] ss:$16 sm:$0xc] %vm4_vm0, %v868_v9  }
  0xec   :  { %875 = vst.msk [vmem:[#allocation0 + $0x24a] ss:$16 sm:$0x30] %vm4_vm0, %v868_v9   ;;  %877 = vst.msk [vmem:[#allocation0 + $0x26a] ss:$16 sm:$0xc0] %vm4_vm0, %v868_v9   ;;  %v906_v10 = vpop.permute.xlu1 %905   ;;  %v893_v11 = vpop.permute.xlu0 %892  }
  0xed   :  { %909 = vst.msk [vmem:[#allocation0 + $0x10b] ss:$16 sm:$0x3] %vm4_vm0, %v906_v10   ;;  %911 = vst.msk [vmem:[#allocation0 + $0x12b] ss:$16 sm:$0xc] %vm4_vm0, %v906_v10  }
  0xee   :  { %913 = vst.msk [vmem:[#allocation0 + $0x14b] ss:$16 sm:$0x30] %vm4_vm0, %v906_v10   ;;  %915 = vst.msk [vmem:[#allocation0 + $0x16b] ss:$16 sm:$0xc0] %vm4_vm0, %v906_v10  }
  0xef   :  { %896 = vst.msk [vmem:[#allocation0 + $0xb] ss:$16 sm:$0x3] %vm4_vm0, %v893_v11   ;;  %898 = vst.msk [vmem:[#allocation0 + $0x2b] ss:$16 sm:$0xc] %vm4_vm0, %v893_v11  }
  0xf0   :  { %900 = vst.msk [vmem:[#allocation0 + $0x4b] ss:$16 sm:$0x30] %vm4_vm0, %v893_v11   ;;  %902 = vst.msk [vmem:[#allocation0 + $0x6b] ss:$16 sm:$0xc0] %vm4_vm0, %v893_v11   ;;  %v932_v12 = vpop.permute.xlu1 %931   ;;  %v919_v13 = vpop.permute.xlu0 %918  }
  0xf1   :  { %935 = vst.msk [vmem:[#allocation0 + $0x12b] ss:$16 sm:$0x3] %vm4_vm0, %v932_v12   ;;  %937 = vst.msk [vmem:[#allocation0 + $0x14b] ss:$16 sm:$0xc] %vm4_vm0, %v932_v12  }
  0xf2   :  { %939 = vst.msk [vmem:[#allocation0 + $0x16b] ss:$16 sm:$0x30] %vm4_vm0, %v932_v12   ;;  %941 = vst.msk [vmem:[#allocation0 + $0x18b] ss:$16 sm:$0xc0] %vm4_vm0, %v932_v12  }
  0xf3   :  { %922 = vst.msk [vmem:[#allocation0 + $0x2b] ss:$16 sm:$0x3] %vm4_vm0, %v919_v13   ;;  %924 = vst.msk [vmem:[#allocation0 + $0x4b] ss:$16 sm:$0xc] %vm4_vm0, %v919_v13  }
  0xf4   :  { %926 = vst.msk [vmem:[#allocation0 + $0x6b] ss:$16 sm:$0x30] %vm4_vm0, %v919_v13   ;;  %928 = vst.msk [vmem:[#allocation0 + $0x8b] ss:$16 sm:$0xc0] %vm4_vm0, %v919_v13   ;;  %v958_v14 = vpop.permute.xlu1 %957   ;;  %v945_v15 = vpop.permute.xlu0 %944  }
  0xf5   :  { %961 = vst.msk [vmem:[#allocation0 + $0x22b] ss:$16 sm:$0x3] %vm4_vm0, %v958_v14   ;;  %963 = vst.msk [vmem:[#allocation0 + $0x24b] ss:$16 sm:$0xc] %vm4_vm0, %v958_v14  }
  0xf6   :  { %965 = vst.msk [vmem:[#allocation0 + $0x26b] ss:$16 sm:$0x30] %vm4_vm0, %v958_v14   ;;  %967 = vst.msk [vmem:[#allocation0 + $0x28b] ss:$16 sm:$0xc0] %vm4_vm0, %v958_v14  }
  0xf7   :  { %948 = vst.msk [vmem:[#allocation0 + $0x20b] ss:$16 sm:$0x3] %vm4_vm0, %v945_v15   ;;  %950 = vst.msk [vmem:[#allocation0 + $0x22b] ss:$16 sm:$0xc] %vm4_vm0, %v945_v15  }
  0xf8   :  { %952 = vst.msk [vmem:[#allocation0 + $0x24b] ss:$16 sm:$0x30] %vm4_vm0, %v945_v15   ;;  %954 = vst.msk [vmem:[#allocation0 + $0x26b] ss:$16 sm:$0xc0] %vm4_vm0, %v945_v15   ;;  %v983_v16 = vpop.permute.xlu1 %982   ;;  %v970_v17 = vpop.permute.xlu0 %969  }
  0xf9   :  { %986 = vst.msk [vmem:[#allocation0 + $0x10c] ss:$16 sm:$0x3] %vm4_vm0, %v983_v16   ;;  %988 = vst.msk [vmem:[#allocation0 + $0x12c] ss:$16 sm:$0xc] %vm4_vm0, %v983_v16  }
  0xfa   :  { %990 = vst.msk [vmem:[#allocation0 + $0x14c] ss:$16 sm:$0x30] %vm4_vm0, %v983_v16   ;;  %992 = vst.msk [vmem:[#allocation0 + $0x16c] ss:$16 sm:$0xc0] %vm4_vm0, %v983_v16  }
  0xfb   :  { %973 = vst.msk [vmem:[#allocation0 + $0xc] ss:$16 sm:$0x3] %vm4_vm0, %v970_v17   ;;  %975 = vst.msk [vmem:[#allocation0 + $0x2c] ss:$16 sm:$0xc] %vm4_vm0, %v970_v17  }
  0xfc   :  { %977 = vst.msk [vmem:[#allocation0 + $0x4c] ss:$16 sm:$0x30] %vm4_vm0, %v970_v17   ;;  %979 = vst.msk [vmem:[#allocation0 + $0x6c] ss:$16 sm:$0xc0] %vm4_vm0, %v970_v17   ;;  %v1009_v18 = vpop.permute.xlu1 %1008   ;;  %v996_v19 = vpop.permute.xlu0 %995  }
  0xfd   :  { %1012 = vst.msk [vmem:[#allocation0 + $0x12c] ss:$16 sm:$0x3] %vm4_vm0, %v1009_v18   ;;  %1014 = vst.msk [vmem:[#allocation0 + $0x14c] ss:$16 sm:$0xc] %vm4_vm0, %v1009_v18  }
  0xfe   :  { %1016 = vst.msk [vmem:[#allocation0 + $0x16c] ss:$16 sm:$0x30] %vm4_vm0, %v1009_v18   ;;  %1018 = vst.msk [vmem:[#allocation0 + $0x18c] ss:$16 sm:$0xc0] %vm4_vm0, %v1009_v18  }
  0xff   :  { %999 = vst.msk [vmem:[#allocation0 + $0x2c] ss:$16 sm:$0x3] %vm4_vm0, %v996_v19   ;;  %1001 = vst.msk [vmem:[#allocation0 + $0x4c] ss:$16 sm:$0xc] %vm4_vm0, %v996_v19  }
 0x100   :  { %1003 = vst.msk [vmem:[#allocation0 + $0x6c] ss:$16 sm:$0x30] %vm4_vm0, %v996_v19   ;;  %1005 = vst.msk [vmem:[#allocation0 + $0x8c] ss:$16 sm:$0xc0] %vm4_vm0, %v996_v19   ;;  %v1035_v20 = vpop.permute.xlu1 %1034   ;;  %v1022_v21 = vpop.permute.xlu0 %1021  }
 0x101   :  { %1038 = vst.msk [vmem:[#allocation0 + $0x22c] ss:$16 sm:$0x3] %vm4_vm0, %v1035_v20   ;;  %1040 = vst.msk [vmem:[#allocation0 + $0x24c] ss:$16 sm:$0xc] %vm4_vm0, %v1035_v20  }
 0x102   :  { %1042 = vst.msk [vmem:[#allocation0 + $0x26c] ss:$16 sm:$0x30] %vm4_vm0, %v1035_v20   ;;  %1044 = vst.msk [vmem:[#allocation0 + $0x28c] ss:$16 sm:$0xc0] %vm4_vm0, %v1035_v20  }
 0x103   :  { %1025 = vst.msk [vmem:[#allocation0 + $0x20c] ss:$16 sm:$0x3] %vm4_vm0, %v1022_v21   ;;  %1027 = vst.msk [vmem:[#allocation0 + $0x22c] ss:$16 sm:$0xc] %vm4_vm0, %v1022_v21  }
 0x104   :  { %1029 = vst.msk [vmem:[#allocation0 + $0x24c] ss:$16 sm:$0x30] %vm4_vm0, %v1022_v21   ;;  %1031 = vst.msk [vmem:[#allocation0 + $0x26c] ss:$16 sm:$0xc0] %vm4_vm0, %v1022_v21   ;;  %v1060_v22 = vpop.permute.xlu1 %1059   ;;  %v1047_v23 = vpop.permute.xlu0 %1046  }
 0x105   :  { %1063 = vst.msk [vmem:[#allocation0 + $0x10d] ss:$16 sm:$0x3] %vm4_vm0, %v1060_v22   ;;  %1065 = vst.msk [vmem:[#allocation0 + $0x12d] ss:$16 sm:$0xc] %vm4_vm0, %v1060_v22  }
 0x106   :  { %1067 = vst.msk [vmem:[#allocation0 + $0x14d] ss:$16 sm:$0x30] %vm4_vm0, %v1060_v22   ;;  %1069 = vst.msk [vmem:[#allocation0 + $0x16d] ss:$16 sm:$0xc0] %vm4_vm0, %v1060_v22  }
 0x107   :  { %1050 = vst.msk [vmem:[#allocation0 + $0xd] ss:$16 sm:$0x3] %vm4_vm0, %v1047_v23   ;;  %1052 = vst.msk [vmem:[#allocation0 + $0x2d] ss:$16 sm:$0xc] %vm4_vm0, %v1047_v23  }
 0x108   :  { %1054 = vst.msk [vmem:[#allocation0 + $0x4d] ss:$16 sm:$0x30] %vm4_vm0, %v1047_v23   ;;  %1056 = vst.msk [vmem:[#allocation0 + $0x6d] ss:$16 sm:$0xc0] %vm4_vm0, %v1047_v23   ;;  %v1086_v24 = vpop.permute.xlu1 %1085   ;;  %v1073_v25 = vpop.permute.xlu0 %1072  }
 0x109   :  { %1089 = vst.msk [vmem:[#allocation0 + $0x12d] ss:$16 sm:$0x3] %vm4_vm0, %v1086_v24   ;;  %1091 = vst.msk [vmem:[#allocation0 + $0x14d] ss:$16 sm:$0xc] %vm4_vm0, %v1086_v24  }
 0x10a   :  { %1093 = vst.msk [vmem:[#allocation0 + $0x16d] ss:$16 sm:$0x30] %vm4_vm0, %v1086_v24   ;;  %1095 = vst.msk [vmem:[#allocation0 + $0x18d] ss:$16 sm:$0xc0] %vm4_vm0, %v1086_v24  }
 0x10b   :  { %1076 = vst.msk [vmem:[#allocation0 + $0x2d] ss:$16 sm:$0x3] %vm4_vm0, %v1073_v25   ;;  %1078 = vst.msk [vmem:[#allocation0 + $0x4d] ss:$16 sm:$0xc] %vm4_vm0, %v1073_v25  }
 0x10c   :  { %1080 = vst.msk [vmem:[#allocation0 + $0x6d] ss:$16 sm:$0x30] %vm4_vm0, %v1073_v25   ;;  %1082 = vst.msk [vmem:[#allocation0 + $0x8d] ss:$16 sm:$0xc0] %vm4_vm0, %v1073_v25   ;;  %v1112_v26 = vpop.permute.xlu1 %1111   ;;  %v1099_v27 = vpop.permute.xlu0 %1098  }
 0x10d   :  { %1115 = vst.msk [vmem:[#allocation0 + $0x22d] ss:$16 sm:$0x3] %vm4_vm0, %v1112_v26   ;;  %1117 = vst.msk [vmem:[#allocation0 + $0x24d] ss:$16 sm:$0xc] %vm4_vm0, %v1112_v26  }
 0x10e   :  { %1119 = vst.msk [vmem:[#allocation0 + $0x26d] ss:$16 sm:$0x30] %vm4_vm0, %v1112_v26   ;;  %1121 = vst.msk [vmem:[#allocation0 + $0x28d] ss:$16 sm:$0xc0] %vm4_vm0, %v1112_v26  }
 0x10f   :  { %1102 = vst.msk [vmem:[#allocation0 + $0x20d] ss:$16 sm:$0x3] %vm4_vm0, %v1099_v27   ;;  %1104 = vst.msk [vmem:[#allocation0 + $0x22d] ss:$16 sm:$0xc] %vm4_vm0, %v1099_v27  }
 0x110   :  { %1106 = vst.msk [vmem:[#allocation0 + $0x24d] ss:$16 sm:$0x30] %vm4_vm0, %v1099_v27   ;;  %1108 = vst.msk [vmem:[#allocation0 + $0x26d] ss:$16 sm:$0xc0] %vm4_vm0, %v1099_v27   ;;  %v1137_v28 = vpop.permute.xlu1 %1136   ;;  %v1124_v29 = vpop.permute.xlu0 %1123  }
 0x111   :  { %1140 = vst.msk [vmem:[#allocation0 + $0x10e] ss:$16 sm:$0x3] %vm4_vm0, %v1137_v28   ;;  %1142 = vst.msk [vmem:[#allocation0 + $0x12e] ss:$16 sm:$0xc] %vm4_vm0, %v1137_v28  }
 0x112   :  { %1144 = vst.msk [vmem:[#allocation0 + $0x14e] ss:$16 sm:$0x30] %vm4_vm0, %v1137_v28   ;;  %1146 = vst.msk [vmem:[#allocation0 + $0x16e] ss:$16 sm:$0xc0] %vm4_vm0, %v1137_v28  }
 0x113   :  { %1127 = vst.msk [vmem:[#allocation0 + $0xe] ss:$16 sm:$0x3] %vm4_vm0, %v1124_v29   ;;  %1129 = vst.msk [vmem:[#allocation0 + $0x2e] ss:$16 sm:$0xc] %vm4_vm0, %v1124_v29  }
 0x114   :  { %1131 = vst.msk [vmem:[#allocation0 + $0x4e] ss:$16 sm:$0x30] %vm4_vm0, %v1124_v29   ;;  %1133 = vst.msk [vmem:[#allocation0 + $0x6e] ss:$16 sm:$0xc0] %vm4_vm0, %v1124_v29   ;;  %v1163_v30 = vpop.permute.xlu1 %1162   ;;  %v1150_v31 = vpop.permute.xlu0 %1149  }
 0x115   :  { %1166 = vst.msk [vmem:[#allocation0 + $0x12e] ss:$16 sm:$0x3] %vm4_vm0, %v1163_v30   ;;  %1168 = vst.msk [vmem:[#allocation0 + $0x14e] ss:$16 sm:$0xc] %vm4_vm0, %v1163_v30  }
 0x116   :  { %1170 = vst.msk [vmem:[#allocation0 + $0x16e] ss:$16 sm:$0x30] %vm4_vm0, %v1163_v30   ;;  %1172 = vst.msk [vmem:[#allocation0 + $0x18e] ss:$16 sm:$0xc0] %vm4_vm0, %v1163_v30  }
 0x117   :  { %1153 = vst.msk [vmem:[#allocation0 + $0x2e] ss:$16 sm:$0x3] %vm4_vm0, %v1150_v31   ;;  %1155 = vst.msk [vmem:[#allocation0 + $0x4e] ss:$16 sm:$0xc] %vm4_vm0, %v1150_v31  }
 0x118   :  { %1157 = vst.msk [vmem:[#allocation0 + $0x6e] ss:$16 sm:$0x30] %vm4_vm0, %v1150_v31   ;;  %1159 = vst.msk [vmem:[#allocation0 + $0x8e] ss:$16 sm:$0xc0] %vm4_vm0, %v1150_v31   ;;  %v1189_v32 = vpop.permute.xlu1 %1188   ;;  %v1176_v33 = vpop.permute.xlu0 %1175  }
 0x119   :  { %1192 = vst.msk [vmem:[#allocation0 + $0x22e] ss:$16 sm:$0x3] %vm4_vm0, %v1189_v32   ;;  %1194 = vst.msk [vmem:[#allocation0 + $0x24e] ss:$16 sm:$0xc] %vm4_vm0, %v1189_v32  }
 0x11a   :  { %1196 = vst.msk [vmem:[#allocation0 + $0x26e] ss:$16 sm:$0x30] %vm4_vm0, %v1189_v32   ;;  %1198 = vst.msk [vmem:[#allocation0 + $0x28e] ss:$16 sm:$0xc0] %vm4_vm0, %v1189_v32  }
 0x11b   :  { %1179 = vst.msk [vmem:[#allocation0 + $0x20e] ss:$16 sm:$0x3] %vm4_vm0, %v1176_v33   ;;  %1181 = vst.msk [vmem:[#allocation0 + $0x22e] ss:$16 sm:$0xc] %vm4_vm0, %v1176_v33  }
 0x11c   :  { %1183 = vst.msk [vmem:[#allocation0 + $0x24e] ss:$16 sm:$0x30] %vm4_vm0, %v1176_v33   ;;  %1185 = vst.msk [vmem:[#allocation0 + $0x26e] ss:$16 sm:$0xc0] %vm4_vm0, %v1176_v33   ;;  %v1214_v34 = vpop.permute.xlu1 %1213   ;;  %v1201_v35 = vpop.permute.xlu0 %1200  }
 0x11d   :  { %1217 = vst.msk [vmem:[#allocation0 + $0x10f] ss:$16 sm:$0x3] %vm4_vm0, %v1214_v34   ;;  %1219 = vst.msk [vmem:[#allocation0 + $0x12f] ss:$16 sm:$0xc] %vm4_vm0, %v1214_v34  }
 0x11e   :  { %1221 = vst.msk [vmem:[#allocation0 + $0x14f] ss:$16 sm:$0x30] %vm4_vm0, %v1214_v34   ;;  %1223 = vst.msk [vmem:[#allocation0 + $0x16f] ss:$16 sm:$0xc0] %vm4_vm0, %v1214_v34  }
 0x11f   :  { %1204 = vst.msk [vmem:[#allocation0 + $0xf] ss:$16 sm:$0x3] %vm4_vm0, %v1201_v35   ;;  %1206 = vst.msk [vmem:[#allocation0 + $0x2f] ss:$16 sm:$0xc] %vm4_vm0, %v1201_v35  }
 0x120   :  { %1208 = vst.msk [vmem:[#allocation0 + $0x4f] ss:$16 sm:$0x30] %vm4_vm0, %v1201_v35   ;;  %1210 = vst.msk [vmem:[#allocation0 + $0x6f] ss:$16 sm:$0xc0] %vm4_vm0, %v1201_v35   ;;  %v1240_v36 = vpop.permute.xlu1 %1239   ;;  %v1227_v37 = vpop.permute.xlu0 %1226  }
 0x121   :  { %1243 = vst.msk [vmem:[#allocation0 + $0x12f] ss:$16 sm:$0x3] %vm4_vm0, %v1240_v36   ;;  %1245 = vst.msk [vmem:[#allocation0 + $0x14f] ss:$16 sm:$0xc] %vm4_vm0, %v1240_v36  }
 0x122   :  { %1247 = vst.msk [vmem:[#allocation0 + $0x16f] ss:$16 sm:$0x30] %vm4_vm0, %v1240_v36   ;;  %1249 = vst.msk [vmem:[#allocation0 + $0x18f] ss:$16 sm:$0xc0] %vm4_vm0, %v1240_v36  }
 0x123   :  { %1230 = vst.msk [vmem:[#allocation0 + $0x2f] ss:$16 sm:$0x3] %vm4_vm0, %v1227_v37   ;;  %1232 = vst.msk [vmem:[#allocation0 + $0x4f] ss:$16 sm:$0xc] %vm4_vm0, %v1227_v37  }
 0x124   :  { %1234 = vst.msk [vmem:[#allocation0 + $0x6f] ss:$16 sm:$0x30] %vm4_vm0, %v1227_v37   ;;  %1236 = vst.msk [vmem:[#allocation0 + $0x8f] ss:$16 sm:$0xc0] %vm4_vm0, %v1227_v37   ;;  %v1266_v38 = vpop.permute.xlu1 %1265   ;;  %v1253_v39 = vpop.permute.xlu0 %1252  }
 0x125   :  { %1269 = vst.msk [vmem:[#allocation0 + $0x22f] ss:$16 sm:$0x3] %vm4_vm0, %v1266_v38   ;;  %1271 = vst.msk [vmem:[#allocation0 + $0x24f] ss:$16 sm:$0xc] %vm4_vm0, %v1266_v38  }
 0x126   :  { %1273 = vst.msk [vmem:[#allocation0 + $0x26f] ss:$16 sm:$0x30] %vm4_vm0, %v1266_v38   ;;  %1275 = vst.msk [vmem:[#allocation0 + $0x28f] ss:$16 sm:$0xc0] %vm4_vm0, %v1266_v38  }
 0x127   :  { %1256 = vst.msk [vmem:[#allocation0 + $0x20f] ss:$16 sm:$0x3] %vm4_vm0, %v1253_v39   ;;  %1258 = vst.msk [vmem:[#allocation0 + $0x22f] ss:$16 sm:$0xc] %vm4_vm0, %v1253_v39  }
 0x128   :  { %1260 = vst.msk [vmem:[#allocation0 + $0x24f] ss:$16 sm:$0x30] %vm4_vm0, %v1253_v39   ;;  %1262 = vst.msk [vmem:[#allocation0 + $0x26f] ss:$16 sm:$0xc0] %vm4_vm0, %v1253_v39  }
 0x129   :  { %1395 = shalt.err (!%p1392_p4)
}
 0x12a   :  { %s1396_s24 = scalar_lea.hbm %s2005_s1, 12288 }
 0x12b   :  { %p1397_p5 = scmp.ne.s32.totalorder %s2005_s1, %s1396_s24  ;;  %p1400_p6 = scmp.lt.u32.totalorder %s1396_s24, %s2005_s1 }
 0x12d   :  { %p1402_p7 = pnand %p1400_p6, %p1397_p5 }
 0x12f   :  { %1405 = shalt.err (!%p1402_p7)
}
 0x130   :  { %1283 = dma.vmem_to_hbm [thread:$0]  %s1281_s20, 12288, %s2005_s1, [#allocation1]  }
 0x131   :  { %1406 = dma.done.wait [#allocation1], 12288  }
 0x132   :  { %1407 = vsyncadd [#allocation1], 4294955008 }
 0x133   :  { %1285 = vsyncpa [#allocation1], 1 }

// kernel: a_call__.3
= control target key start
LH: loop header
LB: loop body
LE: loop exit
PB: predicated region body
PF: predicated region fallthrough
CT: control target
= control target key end

     0   :  { %s1267_s9 = smov 0   ;;  %s1269_s10 = smov 0   ;;  %s1517_s0 = inlined_call_operand.vmem [shape: bf16[1,8,512], index: 0, kind: input, shape index: {}]   ;;  %s1518_s1 = inlined_call_operand.vmem [shape: bf16[1,512,256], index: 1, kind: input, shape index: {}]   ;;  %s1519_s2 = inlined_call_operand.vmem [shape: f32[1,8,256], index: 2, kind: output, shape index: {}]  }
   0x1   :  { %s1271_s11 = smov 0   ;;  %s1273_s12 = smov 0  }
   0x2   :  { %s1275_s13 = smov 0  }
   0x3 LB: > { %s30_s14 = sadd.s32 1, %s1246_s12  ;;  %p86_p1 = scmp.ne.s32.totalorder %s1238_s10, %s1234_s9  ;;  %s1250_s13 = sphi %s1275_s13, %s12_s13   ;;  %s1246_s12 = sphi %s1273_s12, %s1523_s12   ;;  %s1242_s11 = sphi %s1271_s11, %s1522_s11   ;;  %s1238_s10 = sphi %s1269_s10, %s1521_s10   ;;  %s1234_s9 = sphi %s1267_s9, %s1520_s9  }
   0x4   : > { %p32_p0 = scmp.ge.s32.totalorder %s30_s14, 2  ;;  %p87_p2 = scmp.eq.s32.totalorder %s1250_s13, 0 }
   0x5   : > { %s79_s16 = sadd.s32 1, %s1238_s10  ;;  %p1048_p5 = scmp.ge.s32.totalorder %s1250_s13, 2 }
   0x6   : > { %s1525_s14 = smov (%p32_p0, %s30_s14), 0  ;;  %p88_p3 = por %p87_p2, %p86_p1 }
   0x7   : > { %s75_s15 = ssub.s32 %s1246_s12, %s1525_s14  ;;  %159 = sbr.rel (%p1048_p5) target bundleno = 60 (0x3c), region = 20 }
   0x8   : > { %p77_p4 = scmp.eq.s32.totalorder %s75_s15, 0 }
   0xa   : > { %s1302_s17 = scalar_select %p77_p4, %s1238_s10, %s79_s16  }
   0xe   : > { %162 = sbr.rel (!%p88_p3) target bundleno = 60 (0x3c), region = 24  ;;  %s164_s18 = sand.u32 (%p88_p3), 1, %s1238_s10  }
   0xf   : > { %s1050_s19 = sshll.u32 (%p88_p3), %s1246_s12, 2  ;;  %s1049_s20 = sshll.u32 (%p88_p3), %s164_s18, 8 }
  0x10   : > { %s1310_s23 = scalar_lea.vmem (%p88_p3), %s1518_s1, %s1050_s19  ;;  %s1314_s24 = scalar_lea.vmem (%p88_p3), [#allocation3], %s1049_s20 }
  0x11   : > { %v189_v0 = vld [vmem:[%s1310_s23] sm:$0xf] (%p88_p3)  ;;  %v191_v1 = vld [vmem:[%s1310_s23 + $0x8] sm:$0xf] (%p88_p3)  ;;  %v193_v2 = vld [vmem:[%s1310_s23 + $0x10] sm:$0xf] (%p88_p3) }
  0x12   : > { %190 = vst [vmem:[%s1314_s24] sm:$0xf] (%p88_p3), %v189_v0  ;;  %192 = vst [vmem:[%s1314_s24 + $0x4] sm:$0xf] (%p88_p3), %v191_v1  ;;  %v195_v3 = vld [vmem:[%s1310_s23 + $0x18] sm:$0xf] (%p88_p3) }
  0x13   : > { %v197_v4 = vld [vmem:[%s1310_s23 + $0x20] sm:$0xf] (%p88_p3)  ;;  %194 = vst [vmem:[%s1314_s24 + $0x8] sm:$0xf] (%p88_p3), %v193_v2  ;;  %196 = vst [vmem:[%s1314_s24 + $0xc] sm:$0xf] (%p88_p3), %v195_v3 }
  0x14   : > { %198 = vst [vmem:[%s1314_s24 + $0x10] sm:$0xf] (%p88_p3), %v197_v4  ;;  %v199_v5 = vld [vmem:[%s1310_s23 + $0x28] sm:$0xf] (%p88_p3)  ;;  %v201_v6 = vld [vmem:[%s1310_s23 + $0x30] sm:$0xf] (%p88_p3) }
  0x15   : > { %v203_v7 = vld [vmem:[%s1310_s23 + $0x38] sm:$0xf]  ;;  %200 = vst [vmem:[%s1314_s24 + $0x14] sm:$0xf] %v199_v5  ;;  %202 = vst [vmem:[%s1314_s24 + $0x18] sm:$0xf] %v201_v6 }
  0x16   : > { %204 = vst [vmem:[%s1314_s24 + $0x1c] sm:$0xf] %v203_v7  ;;  %v205_v8 = vld [vmem:[%s1310_s23 + $0x40] sm:$0xf]  ;;  %v207_v9 = vld [vmem:[%s1310_s23 + $0x48] sm:$0xf] }
  0x17   : > { %v209_v10 = vld [vmem:[%s1310_s23 + $0x50] sm:$0xf]  ;;  %206 = vst [vmem:[%s1314_s24 + $0x20] sm:$0xf] %v205_v8  ;;  %208 = vst [vmem:[%s1314_s24 + $0x24] sm:$0xf] %v207_v9 }
  0x18   : > { %210 = vst [vmem:[%s1314_s24 + $0x28] sm:$0xf] %v209_v10  ;;  %v211_v11 = vld [vmem:[%s1310_s23 + $0x58] sm:$0xf]  ;;  %v213_v12 = vld [vmem:[%s1310_s23 + $0x60] sm:$0xf] }
  0x19   : > { %v215_v13 = vld [vmem:[%s1310_s23 + $0x68] sm:$0xf]  ;;  %212 = vst [vmem:[%s1314_s24 + $0x2c] sm:$0xf] %v211_v11  ;;  %214 = vst [vmem:[%s1314_s24 + $0x30] sm:$0xf] %v213_v12 }
  0x1a   : > { %216 = vst [vmem:[%s1314_s24 + $0x34] sm:$0xf] %v215_v13  ;;  %v217_v14 = vld [vmem:[%s1310_s23 + $0x70] sm:$0xf]  ;;  %v219_v15 = vld [vmem:[%s1310_s23 + $0x78] sm:$0xf] }
  0x1b   : > { %v221_v16 = vld [vmem:[%s1310_s23 + $0x80] sm:$0xf]  ;;  %218 = vst [vmem:[%s1314_s24 + $0x38] sm:$0xf] %v217_v14  ;;  %220 = vst [vmem:[%s1314_s24 + $0x3c] sm:$0xf] %v219_v15 }
  0x1c   : > { %222 = vst [vmem:[%s1314_s24 + $0x40] sm:$0xf] %v221_v16  ;;  %v223_v17 = vld [vmem:[%s1310_s23 + $0x88] sm:$0xf]  ;;  %v225_v18 = vld [vmem:[%s1310_s23 + $0x90] sm:$0xf] }
  0x1d   : > { %v227_v19 = vld [vmem:[%s1310_s23 + $0x98] sm:$0xf]  ;;  %224 = vst [vmem:[%s1314_s24 + $0x44] sm:$0xf] %v223_v17  ;;  %226 = vst [vmem:[%s1314_s24 + $0x48] sm:$0xf] %v225_v18 }
  0x1e   : > { %228 = vst [vmem:[%s1314_s24 + $0x4c] sm:$0xf] %v227_v19  ;;  %v229_v20 = vld [vmem:[%s1310_s23 + $0xa0] sm:$0xf]  ;;  %v231_v21 = vld [vmem:[%s1310_s23 + $0xa8] sm:$0xf] }
  0x1f   : > { %v233_v22 = vld [vmem:[%s1310_s23 + $0xb0] sm:$0xf]  ;;  %230 = vst [vmem:[%s1314_s24 + $0x50] sm:$0xf] %v229_v20  ;;  %232 = vst [vmem:[%s1314_s24 + $0x54] sm:$0xf] %v231_v21 }
  0x20   : > { %234 = vst [vmem:[%s1314_s24 + $0x58] sm:$0xf] %v233_v22  ;;  %v235_v23 = vld [vmem:[%s1310_s23 + $0xb8] sm:$0xf]  ;;  %v237_v24 = vld [vmem:[%s1310_s23 + $0xc0] sm:$0xf] }
  0x21   : > { %v239_v25 = vld [vmem:[%s1310_s23 + $0xc8] sm:$0xf]  ;;  %236 = vst [vmem:[%s1314_s24 + $0x5c] sm:$0xf] %v235_v23  ;;  %238 = vst [vmem:[%s1314_s24 + $0x60] sm:$0xf] %v237_v24 }
  0x22   : > { %240 = vst [vmem:[%s1314_s24 + $0x64] sm:$0xf] %v239_v25  ;;  %v241_v26 = vld [vmem:[%s1310_s23 + $0xd0] sm:$0xf]  ;;  %v243_v27 = vld [vmem:[%s1310_s23 + $0xd8] sm:$0xf] }
  0x23   : > { %v245_v28 = vld [vmem:[%s1310_s23 + $0xe0] sm:$0xf]  ;;  %242 = vst [vmem:[%s1314_s24 + $0x68] sm:$0xf] %v241_v26  ;;  %244 = vst [vmem:[%s1314_s24 + $0x6c] sm:$0xf] %v243_v27 }
  0x24   : > { %246 = vst [vmem:[%s1314_s24 + $0x70] sm:$0xf] %v245_v28  ;;  %v247_v29 = vld [vmem:[%s1310_s23 + $0xe8] sm:$0xf]  ;;  %v249_v30 = vld [vmem:[%s1310_s23 + $0xf0] sm:$0xf] }
  0x25   : > { %v251_v31 = vld [vmem:[%s1310_s23 + $0xf8] sm:$0xf]  ;;  %248 = vst [vmem:[%s1314_s24 + $0x74] sm:$0xf] %v247_v29  ;;  %250 = vst [vmem:[%s1314_s24 + $0x78] sm:$0xf] %v249_v30 }
  0x26   : > { %252 = vst [vmem:[%s1314_s24 + $0x7c] sm:$0xf] %v251_v31  ;;  %v253_v32 = vld [vmem:[%s1310_s23 + $0x100] sm:$0xf]  ;;  %v255_v33 = vld [vmem:[%s1310_s23 + $0x108] sm:$0xf] }
  0x27   : > { %v257_v34 = vld [vmem:[%s1310_s23 + $0x110] sm:$0xf]  ;;  %254 = vst [vmem:[%s1314_s24 + $0x80] sm:$0xf] %v253_v32  ;;  %256 = vst [vmem:[%s1314_s24 + $0x84] sm:$0xf] %v255_v33 }
  0x28   : > { %258 = vst [vmem:[%s1314_s24 + $0x88] sm:$0xf] %v257_v34  ;;  %v259_v35 = vld [vmem:[%s1310_s23 + $0x118] sm:$0xf]  ;;  %v261_v36 = vld [vmem:[%s1310_s23 + $0x120] sm:$0xf] }
  0x29   : > { %v263_v37 = vld [vmem:[%s1310_s23 + $0x128] sm:$0xf]  ;;  %260 = vst [vmem:[%s1314_s24 + $0x8c] sm:$0xf] %v259_v35  ;;  %262 = vst [vmem:[%s1314_s24 + $0x90] sm:$0xf] %v261_v36 }
  0x2a   : > { %264 = vst [vmem:[%s1314_s24 + $0x94] sm:$0xf] %v263_v37  ;;  %v265_v38 = vld [vmem:[%s1310_s23 + $0x130] sm:$0xf]  ;;  %v267_v39 = vld [vmem:[%s1310_s23 + $0x138] sm:$0xf] }
  0x2b   : > { %v269_v40 = vld [vmem:[%s1310_s23 + $0x140] sm:$0xf]  ;;  %266 = vst [vmem:[%s1314_s24 + $0x98] sm:$0xf] %v265_v38  ;;  %268 = vst [vmem:[%s1314_s24 + $0x9c] sm:$0xf] %v267_v39 }
  0x2c   : > { %270 = vst [vmem:[%s1314_s24 + $0xa0] sm:$0xf] %v269_v40  ;;  %v271_v41 = vld [vmem:[%s1310_s23 + $0x148] sm:$0xf]  ;;  %v273_v42 = vld [vmem:[%s1310_s23 + $0x150] sm:$0xf] }
  0x2d   : > { %v275_v43 = vld [vmem:[%s1310_s23 + $0x158] sm:$0xf]  ;;  %272 = vst [vmem:[%s1314_s24 + $0xa4] sm:$0xf] %v271_v41  ;;  %274 = vst [vmem:[%s1314_s24 + $0xa8] sm:$0xf] %v273_v42 }
  0x2e   : > { %276 = vst [vmem:[%s1314_s24 + $0xac] sm:$0xf] %v275_v43  ;;  %v277_v44 = vld [vmem:[%s1310_s23 + $0x160] sm:$0xf]  ;;  %v279_v45 = vld [vmem:[%s1310_s23 + $0x168] sm:$0xf] }
  0x2f   : > { %v281_v46 = vld [vmem:[%s1310_s23 + $0x170] sm:$0xf]  ;;  %278 = vst [vmem:[%s1314_s24 + $0xb0] sm:$0xf] %v277_v44  ;;  %280 = vst [vmem:[%s1314_s24 + $0xb4] sm:$0xf] %v279_v45 }
  0x30   : > { %282 = vst [vmem:[%s1314_s24 + $0xb8] sm:$0xf] %v281_v46  ;;  %v283_v47 = vld [vmem:[%s1310_s23 + $0x178] sm:$0xf]  ;;  %v285_v48 = vld [vmem:[%s1310_s23 + $0x180] sm:$0xf] }
  0x31   : > { %v287_v49 = vld [vmem:[%s1310_s23 + $0x188] sm:$0xf]  ;;  %284 = vst [vmem:[%s1314_s24 + $0xbc] sm:$0xf] %v283_v47  ;;  %286 = vst [vmem:[%s1314_s24 + $0xc0] sm:$0xf] %v285_v48 }
  0x32   : > { %288 = vst [vmem:[%s1314_s24 + $0xc4] sm:$0xf] %v287_v49  ;;  %v289_v50 = vld [vmem:[%s1310_s23 + $0x190] sm:$0xf]  ;;  %v291_v51 = vld [vmem:[%s1310_s23 + $0x198] sm:$0xf] }
  0x33   : > { %v293_v52 = vld [vmem:[%s1310_s23 + $0x1a0] sm:$0xf]  ;;  %290 = vst [vmem:[%s1314_s24 + $0xc8] sm:$0xf] %v289_v50  ;;  %292 = vst [vmem:[%s1314_s24 + $0xcc] sm:$0xf] %v291_v51 }
  0x34   : > { %294 = vst [vmem:[%s1314_s24 + $0xd0] sm:$0xf] %v293_v52  ;;  %v295_v53 = vld [vmem:[%s1310_s23 + $0x1a8] sm:$0xf]  ;;  %v297_v54 = vld [vmem:[%s1310_s23 + $0x1b0] sm:$0xf] }
  0x35   : > { %v299_v55 = vld [vmem:[%s1310_s23 + $0x1b8] sm:$0xf]  ;;  %296 = vst [vmem:[%s1314_s24 + $0xd4] sm:$0xf] %v295_v53  ;;  %298 = vst [vmem:[%s1314_s24 + $0xd8] sm:$0xf] %v297_v54 }
  0x36   : > { %300 = vst [vmem:[%s1314_s24 + $0xdc] sm:$0xf] %v299_v55  ;;  %v301_v56 = vld [vmem:[%s1310_s23 + $0x1c0] sm:$0xf]  ;;  %v303_v57 = vld [vmem:[%s1310_s23 + $0x1c8] sm:$0xf] }
  0x37   : > { %v305_v58 = vld [vmem:[%s1310_s23 + $0x1d0] sm:$0xf]  ;;  %302 = vst [vmem:[%s1314_s24 + $0xe0] sm:$0xf] %v301_v56  ;;  %304 = vst [vmem:[%s1314_s24 + $0xe4] sm:$0xf] %v303_v57 }
  0x38   : > { %306 = vst [vmem:[%s1314_s24 + $0xe8] sm:$0xf] %v305_v58  ;;  %v307_v59 = vld [vmem:[%s1310_s23 + $0x1d8] sm:$0xf]  ;;  %v309_v60 = vld [vmem:[%s1310_s23 + $0x1e0] sm:$0xf] }
  0x39   : > { %v311_v61 = vld [vmem:[%s1310_s23 + $0x1e8] sm:$0xf]  ;;  %308 = vst [vmem:[%s1314_s24 + $0xec] sm:$0xf] %v307_v59  ;;  %310 = vst [vmem:[%s1314_s24 + $0xf0] sm:$0xf] %v309_v60 }
  0x3a   : > { %312 = vst [vmem:[%s1314_s24 + $0xf4] sm:$0xf] %v311_v61  ;;  %v313_v62 = vld [vmem:[%s1310_s23 + $0x1f0] sm:$0xf]  ;;  %v315_v63 = vld [vmem:[%s1310_s23 + $0x1f8] sm:$0xf] }
  0x3b   : > { %314 = vst [vmem:[%s1314_s24 + $0xf8] sm:$0xf] %v313_v62  ;;  %316 = vst [vmem:[%s1314_s24 + $0xfc] sm:$0xf] %v315_v63 }
  0x3c PF: > { %p1051_p6 = scmp.ge.s32.totalorder %s1250_s13, 1  ;;  %p466_p7 = scmp.lt.s32.totalorder %s1250_s13, 3 }
  0x3e   : > { %p467_p8 = pnand %p1051_p6, %p466_p7 }
  0x3f   : > { %s473_s25 = sand.u32 (!%p467_p8), 1, %s1234_s9   ;;  %v1448_v0 = vld [vmem:[%s1517_s0] sm:$0xff] (!%p467_p8)  ;;  %v1453_v1 = vld [vmem:[%s1517_s0 + $0x8] sm:$0xff] (!%p467_p8)  ;;  %p533_p9 = scmp.lt.s32.totalorder (!%p467_p8), %s1242_s11, 1 }
  0x40   : > { %470 = sbr.rel (%p467_p8) target bundleno = 319 (0x13f), region = 65  ;;  %s1052_s30 = sshll.u32 (!%p467_p8), %s473_s25, 8  ;;  %v1055_v2 = vcombine.high (!%p467_p8), %v1448_v0, %v1448_v0  ;;  %v1057_v3 = vcombine.high (!%p467_p8), %v1453_v1, %v1453_v1  ;;  %v1054_v36 = vcombine.low (!%p467_p8), %v1448_v0, %v1448_v0  ;;  %v1056_v37 = vcombine.low (!%p467_p8), %v1453_v1, %v1453_v1 }
  0x41   : > { %s1459_s3 = scalar_lea.vmem (!%p467_p8), [#allocation3], %s1052_s30 }
  0x42   : > { %v1176_v4 = vld [vmem:[%s1459_s3 + $0x40] sm:$0xff] (!%p467_p8)   ;;  %852 = vmatprep.mubr.bf16.mxu0 (!%p467_p8), %v1055_v2  ;;  %892 = vmatprep.mubr.bf16.mxu1 (!%p467_p8), %v1057_v3  ;;  %v1180_v8 = vld [vmem:[%s1459_s3 + $0x48] sm:$0xff] (!%p467_p8)   ;;  %v1184_v12 = vld [vmem:[%s1459_s3 + $0x50] sm:$0xff] (!%p467_p8)  }
  0x43   : > { %v1177_v5 = vld [vmem:[%s1459_s3 + $0xc0] sm:$0xff] (!%p467_p8)   ;;  %1092 = vmatprep.subr.bf16.mxu0 (!%p467_p8), %v1176_v4  ;;  %v1181_v9 = vld [vmem:[%s1459_s3 + $0xc8] sm:$0xff] (!%p467_p8)   ;;  %v1185_v13 = vld [vmem:[%s1459_s3 + $0xd0] sm:$0xff] (!%p467_p8)  }
  0x44   : > { %v1178_v6 = vld [vmem:[%s1459_s3] sm:$0xff] (!%p467_p8)   ;;  %1114 = vmatprep.subr.bf16.mxu1 (!%p467_p8), %v1177_v5  ;;  %v1182_v10 = vld [vmem:[%s1459_s3 + $0x8] sm:$0xff] (!%p467_p8)   ;;  %v1186_v14 = vld [vmem:[%s1459_s3 + $0x10] sm:$0xff] (!%p467_p8)  }
  0x45   : > { %v1179_v7 = vld [vmem:[%s1459_s3 + $0x80] sm:$0xff] (!%p467_p8)   ;;  %1093 = vmatpush3.bf16.msra.mxu0 (!%p467_p8), %v1178_v6  ;;  %v1183_v11 = vld [vmem:[%s1459_s3 + $0x88] sm:$0xff] (!%p467_p8)   ;;  %v1187_v15 = vld [vmem:[%s1459_s3 + $0x90] sm:$0xff] (!%p467_p8)  }
  0x46   : > { %1115 = vmatpush3.bf16.msra.mxu1 (!%p467_p8), %v1179_v7  ;;  %1094 = vmatprep.subr.bf16.mxu0 (!%p467_p8), %v1180_v8  ;;  %v1188_v16 = vld [vmem:[%s1459_s3 + $0x58] sm:$0xff] (!%p467_p8)   ;;  %v1192_v20 = vld [vmem:[%s1459_s3 + $0x60] sm:$0xff] (!%p467_p8)   ;;  %v1196_v24 = vld [vmem:[%s1459_s3 + $0x68] sm:$0xff] (!%p467_p8)  }
  0x47   : > { %1116 = vmatprep.subr.bf16.mxu1 %v1181_v9  ;;  %v1189_v17 = vld [vmem:[%s1459_s3 + $0xd8] sm:$0xff]   ;;  %v1193_v21 = vld [vmem:[%s1459_s3 + $0xe0] sm:$0xff]   ;;  %v1197_v25 = vld [vmem:[%s1459_s3 + $0xe8] sm:$0xff]   ;;  %s1527_s11 = smov (!%p533_p9, %s1242_s11), 1 }
  0x48   : > { %v1190_v18 = vld [vmem:[%s1459_s3 + $0x18] sm:$0xff]   ;;  %v1194_v22 = vld [vmem:[%s1459_s3 + $0x20] sm:$0xff]   ;;  %v1198_v26 = vld [vmem:[%s1459_s3 + $0x28] sm:$0xff]   ;;  %s1053_s4 = sshll.u32 %s1527_s11, 3 }
  0x49   : > { %1095 = vmatpush3.bf16.msra.mxu0 %v1182_v10  ;;  %v1191_v19 = vld [vmem:[%s1459_s3 + $0x98] sm:$0xff]   ;;  %v1195_v23 = vld [vmem:[%s1459_s3 + $0xa0] sm:$0xff]   ;;  %v1199_v27 = vld [vmem:[%s1459_s3 + $0xa8] sm:$0xff]   ;;  %s540_s7 = scalar_lea.vmem %s1519_s2, %s1053_s4 }
  0x4a   : > { %1117 = vmatpush3.bf16.msra.mxu1 %v1183_v11  ;;  %1096 = vmatprep.subr.bf16.mxu0 %v1184_v12  ;;  %v1200_v28 = vld [vmem:[%s1459_s3 + $0x70] sm:$0xff]   ;;  %v1204_v32 = vld [vmem:[%s1459_s3 + $0x78] sm:$0xff]  }
  0x4b   : > { %1118 = vmatprep.subr.bf16.mxu1 %v1185_v13  ;;  %v1201_v29 = vld [vmem:[%s1459_s3 + $0xf0] sm:$0xff]   ;;  %v1205_v33 = vld [vmem:[%s1459_s3 + $0xf8] sm:$0xff]  }
  0x4c   : > { %v1202_v30 = vld [vmem:[%s1459_s3 + $0x30] sm:$0xff]   ;;  %v1206_v34 = vld [vmem:[%s1459_s3 + $0x38] sm:$0xff]  }
  0x4d   : > { %1097 = vmatpush3.bf16.msra.mxu0 %v1186_v14  ;;  %v1203_v31 = vld [vmem:[%s1459_s3 + $0xb0] sm:$0xff]   ;;  %v1207_v35 = vld [vmem:[%s1459_s3 + $0xb8] sm:$0xff]  }
  0x4e   : > { %1119 = vmatpush3.bf16.msra.mxu1 %v1187_v15  ;;  %1098 = vmatprep.subr.bf16.mxu0 %v1188_v16 }
  0x4f   : > { %1120 = vmatprep.subr.bf16.mxu1 %v1189_v17 }
  0x51   : > { %1099 = vmatpush3.bf16.msra.mxu0 %v1190_v18 }
  0x52   : > { %1121 = vmatpush3.bf16.msra.mxu1 %v1191_v19  ;;  %1100 = vmatprep.subr.bf16.mxu0 %v1192_v20 }
  0x53   : > { %1122 = vmatprep.subr.bf16.mxu1 %v1193_v21 }
  0x55   : > { %1101 = vmatpush3.bf16.msra.mxu0 %v1194_v22 }
  0x56   : > { %1123 = vmatpush3.bf16.msra.mxu1 %v1195_v23  ;;  %1102 = vmatprep.subr.bf16.mxu0 %v1196_v24 }
  0x57   : > { %1124 = vmatprep.subr.bf16.mxu1 %v1197_v25 }
  0x59   : > { %1103 = vmatpush3.bf16.msra.mxu0 %v1198_v26 }
  0x5a   : > { %1125 = vmatpush3.bf16.msra.mxu1 %v1199_v27  ;;  %1104 = vmatprep.subr.bf16.mxu0 %v1200_v28 }
  0x5b   : > { %1126 = vmatprep.subr.bf16.mxu1 %v1201_v29 }
  0x5d   : > { %1105 = vmatpush3.bf16.msra.mxu0 %v1202_v30 }
  0x5e   : > { %1127 = vmatpush3.bf16.msra.mxu1 %v1203_v31  ;;  %1106 = vmatprep.subr.bf16.mxu0 %v1204_v32 }
  0x5f   : > { %1128 = vmatprep.subr.bf16.mxu1 %v1205_v33 }
  0x61   : > { %1107 = vmatpush3.bf16.msra.mxu0 %v1206_v34 }
  0x62   : > { %1129 = vmatpush3.bf16.msra.mxu1 %v1207_v35 }
  0x64   : > { %853 = vmatmul.mubr.bf16.vlgmr.msra.gmra.mrb[0].mxu0 %v1054_v36 }
  0x65   : > { %893 = vmatmul.mubr.bf16.vlgmr.msra.gmra.mrb[0].mxu1 %v1056_v37 }
 0x137   : > { %v1108_v38 = vpop.f32.mrb[0].mxu0 }
 0x138   : > { %v1130_v39 = vpop.f32.mrb[0].mxu1  ;;  %v1109_v40 = vpop.f32.mrb[1].mxu0 }
 0x139   : > { %v1110_v41 = vadd.f32 %v1109_v40, %v1108_v38  ;;  %v1131_v42 = vpop.f32.mrb[1].mxu1  ;;  %v1111_v43 = vpop.f32.mrb[2].mxu0 }
 0x13a   : > { %v1132_v44 = vadd.f32 %v1131_v42, %v1130_v39  ;;  %v1133_v45 = vpop.f32.mrb[2].mxu1  ;;  %v1112_v46 = vpop.f32.mrb[3].mxu0 }
 0x13b   : > { %v1134_v47 = vpop.f32.mrb[3].mxu1 }
 0x13c   : > { %v895_v48 = vadd.f32 %v1132_v44, %v1110_v41 }
 0x13e   : > { %906 = vst [vmem:[%s540_s7] sm:$0xff] %v895_v48 }
 0x13f PF: > { %s12_s13 = sadd.s32 1, %s1250_s13   ;;  %s1520_s9 = smov %s1238_s10 }
 0x140   : > { %p9_p10 = scmp.ge.s32.totalorder %s12_s13, 4   ;;  %s1521_s10 = smov %s1302_s17 }
 0x141   : > { %s1522_s11 = smov %s1246_s12  ;;  %s1523_s12 = smov %s1525_s14 }
 0x142   :  { %11 = sbr.rel (!%p9_p10) target bundleno = 3 (0x3), region = 115 }

// kernel: a_call__.4
= control target key start
LH: loop header
LB: loop body
LE: loop exit
PB: predicated region body
PF: predicated region fallthrough
CT: control target
= control target key end

     0   :  { %s653_s9 = smov 0   ;;  %s655_s10 = smov 0   ;;  %s694_s0 = inlined_call_operand.vmem [shape: bf16[3,16,128], index: 0, kind: input, shape index: {}]   ;;  %s695_s1 = inlined_call_operand.vmem [shape: bf16[3,128,128], index: 1, kind: input, shape index: {}]   ;;  %s696_s2 = inlined_call_operand.vmem [shape: f32[3,16,128], index: 2, kind: output, shape index: {}]  }
   0x1   :  { %s657_s11 = smov 0  }
   0x2 LB: > { %s38_s12 = sadd.s32 1, %s630_s10  ;;  %p527_p0 = scmp.ge.s32.totalorder %s634_s11, 1  ;;  %s634_s11 = sphi %s657_s11, %s12_s11   ;;  %s630_s10 = sphi %s655_s10, %s698_s10   ;;  %s626_s9 = sphi %s653_s9, %s697_s9  }
   0x3   : > { %p40_p1 = scmp.ge.s32.totalorder %s38_s12, 3  ;;  %p176_p2 = scmp.lt.s32.totalorder %s634_s11, 4 }
   0x5   : > { %s700_s12 = smov (%p40_p1, %s38_s12), 0  ;;  %p177_p3 = pnand %p527_p0, %p176_p2 }
   0x6   : > { %p225_p4 = scmp.lt.s32.totalorder (!%p177_p3), %s626_s9, 2  ;;  %v636_v0 = vmov (!%p177_p3), 0.0   ;;  %vm637_vm0 = vmmov (!%p177_p3), 0  }
   0x7   : > { %180 = sbr.rel (%p177_p3) target bundleno = 264 (0x108), region = 28  ;;  %557 = vmatprep.subr.bf16.mxu0 (!%p177_p3), %v636_v0  ;;  %573 = vmatprep.mubr.msk.bf16.mxu0 (!%p177_p3), %vm637_vm0, %v636_v0 }
   0xe   : > { %s702_s9 = smov (!%p225_p4, %s626_s9), 2 }
   0xf   : > { %s546_s13 = sshll.u32 %s702_s9, 6  ;;  %s545_s17 = sshll.u32 %s702_s9, 3 }
  0x10   : > { %s248_s16 = scalar_lea.vmem %s695_s1, %s546_s13  ;;  %s235_s20 = scalar_lea.vmem %s694_s0, %s545_s17 }
  0x11   : > { %v603_v1 = vld [vmem:[%s248_s16] sm:$0xff]   ;;  %v604_v2 = vld [vmem:[%s248_s16 + $0x8] sm:$0xff]   ;;  %v605_v3 = vld [vmem:[%s248_s16 + $0x10] sm:$0xff]   ;;  %s547_s21 = sshll.u32 %s702_s9, 4 }
  0x12   : > { %558 = vmatpush3.bf16.msra.mxu0 %v603_v1  ;;  %v606_v4 = vld [vmem:[%s248_s16 + $0x18] sm:$0xff]   ;;  %v607_v5 = vld [vmem:[%s248_s16 + $0x20] sm:$0xff]   ;;  %v608_v6 = vld [vmem:[%s248_s16 + $0x28] sm:$0xff]   ;;  %s261_s24 = scalar_lea.vmem %s696_s2, %s547_s21 }
  0x13   : > { %559 = vmatprep.subr.bf16.mxu0 %v636_v0  ;;  %v609_v7 = vld [vmem:[%s248_s16 + $0x30] sm:$0xff]   ;;  %v610_v8 = vld [vmem:[%s248_s16 + $0x38] sm:$0xff]   ;;  %v611_v9 = vld [vmem:[%s235_s20] sm:$0xff]  }
  0x16   : > { %560 = vmatpush3.bf16.msra.mxu0 %v604_v2 }
  0x17   : > { %561 = vmatprep.subr.bf16.mxu0 %v636_v0 }
  0x1a   : > { %562 = vmatpush3.bf16.msra.mxu0 %v605_v3 }
  0x1b   : > { %563 = vmatprep.subr.bf16.mxu0 %v636_v0 }
  0x1e   : > { %564 = vmatpush3.bf16.msra.mxu0 %v606_v4 }
  0x1f   : > { %565 = vmatprep.subr.bf16.mxu0 %v636_v0 }
  0x22   : > { %566 = vmatpush3.bf16.msra.mxu0 %v607_v5 }
  0x23   : > { %567 = vmatprep.subr.bf16.mxu0 %v636_v0 }
  0x26   : > { %568 = vmatpush3.bf16.msra.mxu0 %v608_v6 }
  0x27   : > { %569 = vmatprep.subr.bf16.mxu0 %v636_v0 }
  0x2a   : > { %570 = vmatpush3.bf16.msra.mxu0 %v609_v7 }
  0x2b   : > { %571 = vmatprep.subr.bf16.mxu0 %v636_v0 }
  0x2e   : > { %572 = vmatpush3.bf16.msra.mxu0 %v610_v8 }
  0x31   : > { %574 = vmatmul.mubr.bf16.vlgmr.msra.gmra.mrb[0].mxu0 %v611_v9 }
 0x104   : > { %v378_v10 = vpop.f32.mrb[0].mxu0 }
 0x105   : > { %394 = vst [vmem:[%s261_s24] sm:$0xff] %v378_v10  ;;  %v575_v11 = vpop.f32.mrb[1].mxu0 }
 0x106   : > { %v381_v12 = vpop.f32.mrb[2].mxu0 }
 0x107   : > { %395 = vst [vmem:[%s261_s24 + $0x8] sm:$0xff] %v381_v12  ;;  %v576_v13 = vpop.f32.mrb[3].mxu0 }
 0x108 PF: > { %s12_s11 = sadd.s32 1, %s634_s11   ;;  %s697_s9 = smov %s630_s10 }
 0x109   : > { %p9_p5 = scmp.ge.s32.totalorder %s12_s11, 5   ;;  %s698_s10 = smov %s700_s12 }
 0x10b   :  { %11 = sbr.rel (!%p9_p5) target bundleno = 2 (0x2), region = 69 }

// kernel: a_call__.5
= control target key start
LH: loop header
LB: loop body
LE: loop exit
PB: predicated region body
PF: predicated region fallthrough
CT: control target
= control target key end

     0   :  { %s1017_s9 = smov 0   ;;  %s1019_s10 = smov 0   ;;  %s1201_s0 = inlined_call_operand.vmem [shape: bf16[1,16,256], index: 0, kind: input, shape index: {}]   ;;  %s1202_s1 = inlined_call_operand.vmem [shape: bf16[1,256,512], index: 1, kind: input, shape index: {}]   ;;  %s1203_s2 = inlined_call_operand.vmem [shape: f32[1,16,512], index: 2, kind: output, shape index: {}]  }
   0x1   :  { %s1021_s11 = smov 0   ;;  %s1023_s12 = smov 0  }
   0x2   :  { %s1025_s13 = smov 0  }
   0x3 LB: > { %s30_s14 = sadd.s32 1, %s996_s12  ;;  %s819_s15 = sadd.s32 4294967295, %s1000_s13   ;;  %s1000_s13 = sphi %s1025_s13, %s12_s13   ;;  %s996_s12 = sphi %s1023_s12, %s1208_s12   ;;  %s992_s11 = sphi %s1021_s11, %s1207_s11   ;;  %s988_s10 = sphi %s1019_s10, %s1206_s10   ;;  %s984_s9 = sphi %s1017_s9, %s1205_s9  }
   0x4   : > { %p32_p0 = scmp.ge.s32.totalorder %s30_s14, 2  ;;  %p86_p1 = scmp.ne.s32.totalorder %s988_s10, %s984_s9 }
   0x5   : > { %p87_p2 = scmp.eq.s32.totalorder %s1000_s13, 0  ;;  %p120_p4 = scmp.eq.s32.totalorder %s819_s15, 1 }
   0x6   : > { %s1210_s14 = smov (%p32_p0, %s30_s14), 0  ;;  %s79_s17 = sadd.s32 1, %s988_s10 }
   0x7   : > { %p88_p3 = por %p87_p2, %p86_p1  ;;  %s75_s16 = ssub.s32 %s996_s12, %s1210_s14 }
   0x8   : > { %p77_p5 = scmp.eq.s32.totalorder %s75_s16, 0  ;;  %p1052_p6 = por %p120_p4, %p86_p1 }
   0x9   : > { %p823_p7 = scmp.ge.s32.totalorder %s1000_s13, 2 }
   0xa   : > { %s1057_s19 = scalar_select %p77_p5, %s988_s10, %s79_s17  }
   0xb   : > { %161 = sbr.rel (%p823_p7) target bundleno = 38 (0x26), region = 20 }
  0x12   : > { %164 = sbr.rel (!%p88_p3) target bundleno = 38 (0x26), region = 24  ;;  %s166_s20 = sand.u32 (%p88_p3), 1, %s988_s10  }
  0x13   : > { %s869_s21 = sshll.u32 (%p88_p3), %s996_s12, 3  ;;  %s824_s22 = sshll.u32 (%p88_p3), %s166_s20, 8 }
  0x14   : > { %s1065_s25 = scalar_lea.vmem (%p88_p3), %s1202_s1, %s869_s21  ;;  %s1070_s26 = scalar_lea.vmem (%p88_p3), [#allocation3], %s824_s22 }
  0x15   : > { %v266_v0 = vld [vmem:[%s1065_s25] sm:$0xff] (%p88_p3)  ;;  %v268_v1 = vld [vmem:[%s1065_s25 + $0x10] sm:$0xff] (%p88_p3) }
  0x16   : > { %v270_v2 = vld [vmem:[%s1065_s25 + $0x20] sm:$0xff] (%p88_p3)  ;;  %267 = vst [vmem:[%s1070_s26] sm:$0xff] (%p88_p3), %v266_v0  ;;  %269 = vst [vmem:[%s1070_s26 + $0x8] sm:$0xff] (%p88_p3), %v268_v1  ;;  %v272_v3 = vld [vmem:[%s1065_s25 + $0x30] sm:$0xff] (%p88_p3) }
  0x17   : > { %271 = vst [vmem:[%s1070_s26 + $0x10] sm:$0xff] (%p88_p3), %v270_v2  ;;  %v274_v4 = vld [vmem:[%s1065_s25 + $0x40] sm:$0xff] (%p88_p3)  ;;  %v276_v5 = vld [vmem:[%s1065_s25 + $0x50] sm:$0xff] (%p88_p3)  ;;  %273 = vst [vmem:[%s1070_s26 + $0x18] sm:$0xff] (%p88_p3), %v272_v3 }
  0x18   : > { %275 = vst [vmem:[%s1070_s26 + $0x20] sm:$0xff] (%p88_p3), %v274_v4  ;;  %277 = vst [vmem:[%s1070_s26 + $0x28] sm:$0xff] (%p88_p3), %v276_v5  ;;  %v278_v6 = vld [vmem:[%s1065_s25 + $0x60] sm:$0xff] (%p88_p3)  ;;  %v280_v7 = vld [vmem:[%s1065_s25 + $0x70] sm:$0xff] (%p88_p3) }
  0x19   : > { %v282_v8 = vld [vmem:[%s1065_s25 + $0x80] sm:$0xff]  ;;  %279 = vst [vmem:[%s1070_s26 + $0x30] sm:$0xff] %v278_v6  ;;  %281 = vst [vmem:[%s1070_s26 + $0x38] sm:$0xff] %v280_v7  ;;  %v284_v9 = vld [vmem:[%s1065_s25 + $0x90] sm:$0xff] }
  0x1a   : > { %283 = vst [vmem:[%s1070_s26 + $0x40] sm:$0xff] %v282_v8  ;;  %v286_v10 = vld [vmem:[%s1065_s25 + $0xa0] sm:$0xff]  ;;  %v288_v11 = vld [vmem:[%s1065_s25 + $0xb0] sm:$0xff]  ;;  %285 = vst [vmem:[%s1070_s26 + $0x48] sm:$0xff] %v284_v9 }
  0x1b   : > { %287 = vst [vmem:[%s1070_s26 + $0x50] sm:$0xff] %v286_v10  ;;  %289 = vst [vmem:[%s1070_s26 + $0x58] sm:$0xff] %v288_v11  ;;  %v290_v12 = vld [vmem:[%s1065_s25 + $0xc0] sm:$0xff]  ;;  %v292_v13 = vld [vmem:[%s1065_s25 + $0xd0] sm:$0xff] }
  0x1c   : > { %v294_v14 = vld [vmem:[%s1065_s25 + $0xe0] sm:$0xff]  ;;  %291 = vst [vmem:[%s1070_s26 + $0x60] sm:$0xff] %v290_v12  ;;  %293 = vst [vmem:[%s1070_s26 + $0x68] sm:$0xff] %v292_v13  ;;  %v296_v15 = vld [vmem:[%s1065_s25 + $0xf0] sm:$0xff] }
  0x1d   : > { %295 = vst [vmem:[%s1070_s26 + $0x70] sm:$0xff] %v294_v14  ;;  %v298_v16 = vld [vmem:[%s1065_s25 + $0x100] sm:$0xff]  ;;  %v300_v17 = vld [vmem:[%s1065_s25 + $0x110] sm:$0xff]  ;;  %297 = vst [vmem:[%s1070_s26 + $0x78] sm:$0xff] %v296_v15 }
  0x1e   : > { %299 = vst [vmem:[%s1070_s26 + $0x80] sm:$0xff] %v298_v16  ;;  %301 = vst [vmem:[%s1070_s26 + $0x88] sm:$0xff] %v300_v17  ;;  %v302_v18 = vld [vmem:[%s1065_s25 + $0x120] sm:$0xff]  ;;  %v304_v19 = vld [vmem:[%s1065_s25 + $0x130] sm:$0xff] }
  0x1f   : > { %v306_v20 = vld [vmem:[%s1065_s25 + $0x140] sm:$0xff]  ;;  %303 = vst [vmem:[%s1070_s26 + $0x90] sm:$0xff] %v302_v18  ;;  %305 = vst [vmem:[%s1070_s26 + $0x98] sm:$0xff] %v304_v19  ;;  %v308_v21 = vld [vmem:[%s1065_s25 + $0x150] sm:$0xff] }
  0x20   : > { %307 = vst [vmem:[%s1070_s26 + $0xa0] sm:$0xff] %v306_v20  ;;  %v310_v22 = vld [vmem:[%s1065_s25 + $0x160] sm:$0xff]  ;;  %v312_v23 = vld [vmem:[%s1065_s25 + $0x170] sm:$0xff]  ;;  %309 = vst [vmem:[%s1070_s26 + $0xa8] sm:$0xff] %v308_v21 }
  0x21   : > { %311 = vst [vmem:[%s1070_s26 + $0xb0] sm:$0xff] %v310_v22  ;;  %313 = vst [vmem:[%s1070_s26 + $0xb8] sm:$0xff] %v312_v23  ;;  %v314_v24 = vld [vmem:[%s1065_s25 + $0x180] sm:$0xff]  ;;  %v316_v25 = vld [vmem:[%s1065_s25 + $0x190] sm:$0xff] }
  0x22   : > { %v318_v26 = vld [vmem:[%s1065_s25 + $0x1a0] sm:$0xff]  ;;  %315 = vst [vmem:[%s1070_s26 + $0xc0] sm:$0xff] %v314_v24  ;;  %317 = vst [vmem:[%s1070_s26 + $0xc8] sm:$0xff] %v316_v25  ;;  %v320_v27 = vld [vmem:[%s1065_s25 + $0x1b0] sm:$0xff] }
  0x23   : > { %319 = vst [vmem:[%s1070_s26 + $0xd0] sm:$0xff] %v318_v26  ;;  %v322_v28 = vld [vmem:[%s1065_s25 + $0x1c0] sm:$0xff]  ;;  %v324_v29 = vld [vmem:[%s1065_s25 + $0x1d0] sm:$0xff]  ;;  %321 = vst [vmem:[%s1070_s26 + $0xd8] sm:$0xff] %v320_v27 }
  0x24   : > { %323 = vst [vmem:[%s1070_s26 + $0xe0] sm:$0xff] %v322_v28  ;;  %325 = vst [vmem:[%s1070_s26 + $0xe8] sm:$0xff] %v324_v29  ;;  %v326_v30 = vld [vmem:[%s1065_s25 + $0x1e0] sm:$0xff]  ;;  %v328_v31 = vld [vmem:[%s1065_s25 + $0x1f0] sm:$0xff] }
  0x25   : > { %327 = vst [vmem:[%s1070_s26 + $0xf0] sm:$0xff] %v326_v30  ;;  %329 = vst [vmem:[%s1070_s26 + $0xf8] sm:$0xff] %v328_v31 }
  0x26 PF: > { %p827_p8 = scmp.ge.s32.totalorder %s1000_s13, 1  ;;  %p334_p9 = scmp.lt.s32.totalorder %s1000_s13, 3 }
  0x28   : > { %p335_p10 = pnand %p827_p8, %p334_p9 }
  0x29   : > { %s341_s27 = sand.u32 (!%p335_p10), 1, %s984_s9   ;;  %v961_v32 = vld [vmem:[%s1201_s0 + $0x4] ss:$8 sps:$4 sm:$0xff] (!%p335_p10)   ;;  %v959_v1 = vld [vmem:[%s1201_s0] ss:$8 sps:$4 sm:$0xff] (!%p335_p10)  }
  0x2a   : > { %338 = sbr.rel (%p335_p10) target bundleno = 333 (0x14d), region = 62  ;;  %s828_s28 = sshll.u32 (!%p335_p10), %s341_s27, 8  ;;  %643 = vmatprep.mubr.bf16.mxu0 (!%p335_p10), %v961_v32 }
  0x2b   : > { %s1141_s3 = scalar_lea.vmem (!%p335_p10), [#allocation3], %s828_s28  ;;  %s829_s6 = sshll.u32 (!%p335_p10), %s341_s27, 5 }
  0x2c   : > { %v911_v33 = vld [vmem:[%s1141_s3 + $0x4] ss:$8 sps:$4 sm:$0xff] (!%p335_p10)   ;;  %v913_v34 = vld [vmem:[%s1141_s3] ss:$8 sps:$4 sm:$0xff] (!%p335_p10)   ;;  %v914_v35 = vld [vmem:[%s1141_s3 + $0x14] ss:$8 sps:$4 sm:$0xff] (!%p335_p10)  }
  0x2d   : > { %611 = vmatprep.subr.bf16.mxu0 (!%p335_p10), %v911_v33  ;;  %v916_v36 = vld [vmem:[%s1141_s3 + $0x10] ss:$8 sps:$4 sm:$0xff] (!%p335_p10)   ;;  %v917_v37 = vld [vmem:[%s1141_s3 + $0x24] ss:$8 sps:$4 sm:$0xff] (!%p335_p10)   ;;  %v919_v38 = vld [vmem:[%s1141_s3 + $0x20] ss:$8 sps:$4 sm:$0xff] (!%p335_p10)  }
  0x2e   : > { %612 = vmatpush1.bf16.msra.mxu0 (!%p335_p10), %v913_v34  ;;  %v920_v39 = vld [vmem:[%s1141_s3 + $0x34] ss:$8 sps:$4 sm:$0xff] (!%p335_p10)   ;;  %v922_v40 = vld [vmem:[%s1141_s3 + $0x30] ss:$8 sps:$4 sm:$0xff] (!%p335_p10)   ;;  %v923_v41 = vld [vmem:[%s1141_s3 + $0x44] ss:$8 sps:$4 sm:$0xff] (!%p335_p10)  }
  0x2f   : > { %613 = vmatprep.subr.bf16.mxu0 (!%p335_p10), %v914_v35  ;;  %v925_v42 = vld [vmem:[%s1141_s3 + $0x40] ss:$8 sps:$4 sm:$0xff] (!%p335_p10)   ;;  %v926_v43 = vld [vmem:[%s1141_s3 + $0x54] ss:$8 sps:$4 sm:$0xff] (!%p335_p10)   ;;  %v928_v44 = vld [vmem:[%s1141_s3 + $0x50] ss:$8 sps:$4 sm:$0xff] (!%p335_p10)  }
  0x30   : > { %v929_v45 = vld [vmem:[%s1141_s3 + $0x64] ss:$8 sps:$4 sm:$0xff] (!%p335_p10)   ;;  %v931_v46 = vld [vmem:[%s1141_s3 + $0x60] ss:$8 sps:$4 sm:$0xff] (!%p335_p10)   ;;  %v932_v47 = vld [vmem:[%s1141_s3 + $0x74] ss:$8 sps:$4 sm:$0xff] (!%p335_p10)  }
  0x31   : > { %v934_v48 = vld [vmem:[%s1141_s3 + $0x70] ss:$8 sps:$4 sm:$0xff]   ;;  %v935_v49 = vld [vmem:[%s1141_s3 + $0x84] ss:$8 sps:$4 sm:$0xff]   ;;  %v937_v50 = vld [vmem:[%s1141_s3 + $0x80] ss:$8 sps:$4 sm:$0xff]  }
  0x32   : > { %614 = vmatpush1.bf16.msra.mxu0 %v916_v36  ;;  %v938_v51 = vld [vmem:[%s1141_s3 + $0x94] ss:$8 sps:$4 sm:$0xff]   ;;  %v940_v52 = vld [vmem:[%s1141_s3 + $0x90] ss:$8 sps:$4 sm:$0xff]   ;;  %v941_v53 = vld [vmem:[%s1141_s3 + $0xa4] ss:$8 sps:$4 sm:$0xff]  }
  0x33   : > { %615 = vmatprep.subr.bf16.mxu0 %v917_v37  ;;  %v943_v54 = vld [vmem:[%s1141_s3 + $0xa0] ss:$8 sps:$4 sm:$0xff]   ;;  %v944_v55 = vld [vmem:[%s1141_s3 + $0xb4] ss:$8 sps:$4 sm:$0xff]   ;;  %v946_v56 = vld [vmem:[%s1141_s3 + $0xb0] ss:$8 sps:$4 sm:$0xff]  }
  0x34   : > { %v947_v57 = vld [vmem:[%s1141_s3 + $0xc4] ss:$8 sps:$4 sm:$0xff]   ;;  %v949_v58 = vld [vmem:[%s1141_s3 + $0xc0] ss:$8 sps:$4 sm:$0xff]   ;;  %v950_v59 = vld [vmem:[%s1141_s3 + $0xd4] ss:$8 sps:$4 sm:$0xff]  }
  0x35   : > { %v952_v60 = vld [vmem:[%s1141_s3 + $0xd0] ss:$8 sps:$4 sm:$0xff]   ;;  %v953_v61 = vld [vmem:[%s1141_s3 + $0xe4] ss:$8 sps:$4 sm:$0xff]   ;;  %v955_v62 = vld [vmem:[%s1141_s3 + $0xe0] ss:$8 sps:$4 sm:$0xff]  }
  0x36   : > { %616 = vmatpush1.bf16.msra.mxu0 %v919_v38  ;;  %v956_v63 = vld [vmem:[%s1141_s3 + $0xf4] ss:$8 sps:$4 sm:$0xff]   ;;  %v958_v0 = vld [vmem:[%s1141_s3 + $0xf0] ss:$8 sps:$4 sm:$0xff]   ;;  %s374_s7 = scalar_lea.vmem [#allocation4], %s829_s6  ;;  %s870_s8 = sshll.u32 (%p1052_p6), %s992_s11, 4 }
  0x37   : > { %617 = vmatprep.subr.bf16.mxu0 %v920_v39  ;;  %s687_s16 = scalar_lea.vmem (%p1052_p6), %s1203_s2, %s870_s8 }
  0x3a   : > { %618 = vmatpush1.bf16.msra.mxu0 %v922_v40 }
  0x3b   : > { %619 = vmatprep.subr.bf16.mxu0 %v923_v41 }
  0x3e   : > { %620 = vmatpush1.bf16.msra.mxu0 %v925_v42 }
  0x3f   : > { %621 = vmatprep.subr.bf16.mxu0 %v926_v43 }
  0x42   : > { %622 = vmatpush1.bf16.msra.mxu0 %v928_v44 }
  0x43   : > { %623 = vmatprep.subr.bf16.mxu0 %v929_v45 }
  0x46   : > { %624 = vmatpush1.bf16.msra.mxu0 %v931_v46 }
  0x47   : > { %625 = vmatprep.subr.bf16.mxu0 %v932_v47 }
  0x4a   : > { %626 = vmatpush1.bf16.msra.mxu0 %v934_v48 }
  0x4b   : > { %627 = vmatprep.subr.bf16.mxu0 %v935_v49 }
  0x4e   : > { %628 = vmatpush1.bf16.msra.mxu0 %v937_v50 }
  0x4f   : > { %629 = vmatprep.subr.bf16.mxu0 %v938_v51 }
  0x52   : > { %630 = vmatpush1.bf16.msra.mxu0 %v940_v52 }
  0x53   : > { %631 = vmatprep.subr.bf16.mxu0 %v941_v53 }
  0x56   : > { %632 = vmatpush1.bf16.msra.mxu0 %v943_v54 }
  0x57   : > { %633 = vmatprep.subr.bf16.mxu0 %v944_v55 }
  0x5a   : > { %634 = vmatpush1.bf16.msra.mxu0 %v946_v56 }
  0x5b   : > { %635 = vmatprep.subr.bf16.mxu0 %v947_v57 }
  0x5e   : > { %636 = vmatpush1.bf16.msra.mxu0 %v949_v58 }
  0x5f   : > { %637 = vmatprep.subr.bf16.mxu0 %v950_v59 }
  0x62   : > { %638 = vmatpush1.bf16.msra.mxu0 %v952_v60 }
  0x63   : > { %639 = vmatprep.subr.bf16.mxu0 %v953_v61 }
  0x66   : > { %640 = vmatpush1.bf16.msra.mxu0 %v955_v62 }
  0x67   : > { %641 = vmatprep.subr.bf16.mxu0 %v956_v63 }
  0x6a   : > { %642 = vmatpush1.bf16.msra.mxu0 %v958_v0 }
  0x6d   : > { %644 = vmatmul.mubr.bf16.vlgmr.msra.gmra.mrb[0].mxu0 %v959_v1 }
 0x13e   : > { %679 = sbr.rel (!%p1052_p6) target bundleno = 333 (0x14d), region = 78 }
 0x140   : > { %v645_v2 = vpop.f32.mrb[0].mxu0 }
 0x141   : > { %669 = vst [vmem:[%s374_s7] sm:$0xff] %v645_v2  ;;  %v647_v3 = vpop.f32.mrb[1].mxu0 }
 0x142   : > { %670 = vst [vmem:[%s374_s7 + $0x8] sm:$0xff] %v647_v3  ;;  %v649_v4 = vpop.f32.mrb[2].mxu0 }
 0x143   : > { %671 = vst [vmem:[%s374_s7 + $0x10] sm:$0xff] %v649_v4  ;;  %v651_v5 = vpop.f32.mrb[3].mxu0 }
 0x144   : > { %672 = vst [vmem:[%s374_s7 + $0x18] sm:$0xff] %v651_v5 }
 0x148   : > { %v700_v6 = vld [vmem:[%s374_s7] sm:$0xff] }
 0x149   : > { %v702_v7 = vld [vmem:[%s374_s7 + $0x8] sm:$0xff]  ;;  %701 = vst [vmem:[%s687_s16] sm:$0xff] %v700_v6 }
 0x14a   : > { %v704_v8 = vld [vmem:[%s374_s7 + $0x10] sm:$0xff]  ;;  %703 = vst [vmem:[%s687_s16 + $0x8] sm:$0xff] %v702_v7 }
 0x14b   : > { %v706_v9 = vld [vmem:[%s374_s7 + $0x18] sm:$0xff]  ;;  %705 = vst [vmem:[%s687_s16 + $0x20] sm:$0xff] %v704_v8 }
 0x14c   : > { %707 = vst [vmem:[%s687_s16 + $0x28] sm:$0xff] %v706_v9 }
 0x14d PF: > { %s12_s13 = sadd.s32 1, %s1000_s13   ;;  %s1205_s9 = smov %s988_s10 }
 0x14e   : > { %p9_p11 = scmp.ge.s32.totalorder %s12_s13, 4   ;;  %s1206_s10 = smov %s1057_s19 }
 0x14f   : > { %s1207_s11 = smov %s996_s12  ;;  %s1208_s12 = smov %s1210_s14 }
 0x150   :  { %11 = sbr.rel (!%p9_p11) target bundleno = 3 (0x3), region = 135 }

</bundles_post_ra>
